<compile_context>
chip_gen: v6e
topology: v6e:2x2x1
jax: 0.10.0
libtpu: 0.0.40
codegen_flags: <defaults>
</compile_context>

<pallas_src>
import functools
from math import sqrt

import jax
import jax.numpy as jnp
from jax.experimental import pallas as pl
from jax.experimental.pallas import tpu as pltpu


# ---------------------------------------------------------------------------
# helpers
# ---------------------------------------------------------------------------
def _m_tile(m, target=256):
    """Pick an M tile: the whole M if small, else a divisor-of-M tile <= target."""
    if m <= target:
        return m
    for t in (256, 128, 64, 32, 16, 8):
        if t <= target and m % t == 0:
            return t
    return target  # ragged tail handled by Pallas masking


def _parallel(n_axes=1):
    return pltpu.CompilerParams(dimension_semantics=("parallel",) * n_axes)


# ---------------------------------------------------------------------------
# Pallas kernels
# ---------------------------------------------------------------------------
def _linear_kernel(x_ref, w_ref, b_ref, o_ref):
    """o = x @ w + b, used for the fused QKV projection."""
    y = jnp.dot(x_ref[...], w_ref[...], preferred_element_type=jnp.float32)
    o_ref[...] = (y + b_ref[...]).astype(o_ref.dtype)


def _attention_kernel(q_ref, k_ref, v_ref, o_ref, a_ref, *, scale):
    """One (batch, head) per grid step. q,k,v blocks: (1, L, E)."""
    q = q_ref[0].astype(jnp.float32) * scale   # fold 1/sqrt(E): L*E muls, not L*L
    k = k_ref[0]
    v = v_ref[0]
    s = jnp.dot(q, k.T, preferred_element_type=jnp.float32)        # (L, L)
    m = jnp.max(s, axis=-1, keepdims=True)
    p = jnp.exp(s - m)
    a = p * pl.reciprocal(jnp.sum(p, axis=-1, keepdims=True), approx=True)
    o_ref[0] = jnp.dot(a.astype(v.dtype), v,
                       preferred_element_type=jnp.float32).astype(o_ref.dtype)
    a_ref[0] = a.astype(a_ref.dtype)


def _proj_residual_ln_kernel(res_ref, x_ref, w_ref, b_ref, g_ref, bt_ref, o_ref, *, eps):
    """o = LayerNorm(res + x @ w + b): out-projection with fused residual + LN."""
    y = jnp.dot(x_ref[...], w_ref[...], preferred_element_type=jnp.float32) + b_ref[...]
    z = res_ref[...].astype(jnp.float32) + y
    mu = jnp.mean(z, axis=-1, keepdims=True)
    var = jnp.mean((z - mu) ** 2, axis=-1, keepdims=True)
    zn = (z - mu) * jax.lax.rsqrt(var + eps)
    o_ref[...] = (zn * g_ref[...] + bt_ref[...]).astype(o_ref.dtype)


def _ffn_residual_ln_kernel(x_ref, w1_ref, b1_ref, w2_ref, b2_ref, g_ref, bt_ref,
                            o_ref, *, eps):
    """o = LayerNorm(x + relu(x@w1+b1)@w2 + b2); (tile_M, d_ff) stays on-chip."""
    x = x_ref[...]
    h = jnp.dot(x, w1_ref[...], preferred_element_type=jnp.float32) + b1_ref[...]
    h = jnp.maximum(h, 0.0)
    y = jnp.dot(h.astype(x.dtype), w2_ref[...],
                preferred_element_type=jnp.float32) + b2_ref[...]
    z = x.astype(jnp.float32) + y
    mu = jnp.mean(z, axis=-1, keepdims=True)
    var = jnp.mean((z - mu) ** 2, axis=-1, keepdims=True)
    zn = (z - mu) * jax.lax.rsqrt(var + eps)
    o_ref[...] = (zn * g_ref[...] + bt_ref[...]).astype(o_ref.dtype)


def _ln_kernel(x_ref, g_ref, b_ref, o_ref, *, eps):
    """Plain LayerNorm over the last dim."""
    z = x_ref[...].astype(jnp.float32)
    mu = jnp.mean(z, axis=-1, keepdims=True)
    var = jnp.mean((z - mu) ** 2, axis=-1, keepdims=True)
    zn = (z - mu) * jax.lax.rsqrt(var + eps)
    o_ref[...] = (zn * g_ref[...] + b_ref[...]).astype(o_ref.dtype)


def _conv_block_kernel(x_ref, w_ref, b_ref, bng_ref, bnb_ref, bnm_ref, bnv_ref,
                       o_ref, pool_ref, *, L, L_out, eps):
    """Informer ConvLayer for one batch element:
    circular Conv1d(k=3) (as a single im2col matmul) -> BatchNorm(eval) -> ELU ->
    MaxPool1d(k=3, s=2, p=1) via -inf-padded scratch + stride-2 reads."""
    x = x_ref[0].astype(jnp.float32)                              # (L, D)
    # circular-pad taps as shifted copies; im2col on the lane axis -> one K=3D matmul
    x_prev = jnp.concatenate([x[-1:, :], x[:-1, :]], axis=0)
    x_next = jnp.concatenate([x[1:, :], x[:1, :]], axis=0)
    col = jnp.concatenate([x_prev, x, x_next], axis=-1)           # (L, 3D)
    y = jnp.dot(col, w_ref[...], preferred_element_type=jnp.float32) + b_ref[...]
    # BatchNorm1d (eval mode) over the channel dim (last)
    y = (y - bnm_ref[...]) * jax.lax.rsqrt(bnv_ref[...] + eps)
    y = y * bng_ref[...] + bnb_ref[...]
    # ELU (alpha = 1); clamp the exp arg so the unselected branch stays finite
    y = jnp.where(y > 0, y, jnp.exp(jnp.minimum(y, 0.0)) - 1.0)
    # MaxPool1d(kernel=3, stride=2, padding=1): pad with -inf, three stride-2 views
    pool_ref[...] = jnp.full(pool_ref.shape, -jnp.inf, jnp.float32)
    pool_ref[pl.ds(1, L), :] = y
    c0 = pool_ref[pl.ds(0, L_out, stride=2), :]
    c1 = pool_ref[pl.ds(1, L_out, stride=2), :]
    c2 = pool_ref[pl.ds(2, L_out, stride=2), :]
    o_ref[0] = jnp.maximum(jnp.maximum(c0, c1), c2).astype(o_ref.dtype)


# ---------------------------------------------------------------------------
# Wrappers (plain-JAX glue around the Pallas kernels)
# ---------------------------------------------------------------------------
def fused_qkv(x2, wqkv, bqkv):
    M, K = x2.shape
    N = wqkv.shape[1]
    tm = _m_tile(M)
    return pl.pallas_call(
        _linear_kernel,
        out_shape=jax.ShapeDtypeStruct((M, N), x2.dtype),
        grid=(pl.cdiv(M, tm),),
        in_specs=[pl.BlockSpec((tm, K), lambda i: (i, 0)),
                  pl.BlockSpec((K, N), lambda i: (0, 0)),
                  pl.BlockSpec((1, N), lambda i: (0, 0))],
        out_specs=pl.BlockSpec((tm, N), lambda i: (i, 0)),
        compiler_params=_parallel(),
    )(x2, wqkv, bqkv)


def attention(q, k, v, scale, out_dtype):
    N, L, E = q.shape
    return pl.pallas_call(
        functools.partial(_attention_kernel, scale=scale),
        out_shape=(jax.ShapeDtypeStruct((N, L, E), out_dtype),
                   jax.ShapeDtypeStruct((N, L, L), jnp.float32)),
        grid=(N,),
        in_specs=[pl.BlockSpec((1, L, E), lambda n: (n, 0, 0)),
                  pl.BlockSpec((1, L, E), lambda n: (n, 0, 0)),
                  pl.BlockSpec((1, L, E), lambda n: (n, 0, 0))],
        out_specs=(pl.BlockSpec((1, L, E), lambda n: (n, 0, 0)),
                   pl.BlockSpec((1, L, L), lambda n: (n, 0, 0))),
        compiler_params=_parallel(),
    )(q, k, v)


def proj_residual_ln(res2, x2, w, b, g, beta, eps=1e-5):
    M, K = x2.shape
    D = w.shape[1]
    tm = _m_tile(M)
    return pl.pallas_call(
        functools.partial(_proj_residual_ln_kernel, eps=eps),
        out_shape=jax.ShapeDtypeStruct((M, D), x2.dtype),
        grid=(pl.cdiv(M, tm),),
        in_specs=[pl.BlockSpec((tm, D), lambda i: (i, 0)),
                  pl.BlockSpec((tm, K), lambda i: (i, 0)),
                  pl.BlockSpec((K, D), lambda i: (0, 0)),
                  pl.BlockSpec((1, D), lambda i: (0, 0)),
                  pl.BlockSpec((1, D), lambda i: (0, 0)),
                  pl.BlockSpec((1, D), lambda i: (0, 0))],
        out_specs=pl.BlockSpec((tm, D), lambda i: (i, 0)),
        compiler_params=_parallel(),
    )(res2, x2, w, b, g, beta)


def ffn_residual_ln(x2, w1, b1, w2, b2, g, beta, eps=1e-5):
    M, D = x2.shape
    F = w1.shape[1]
    tm = _m_tile(M, target=128)   # keep the (tm, d_ff) intermediate small on-chip
    return pl.pallas_call(
        functools.partial(_ffn_residual_ln_kernel, eps=eps),
        out_shape=jax.ShapeDtypeStruct((M, D), x2.dtype),
        grid=(pl.cdiv(M, tm),),
        in_specs=[pl.BlockSpec((tm, D), lambda i: (i, 0)),
                  pl.BlockSpec((D, F), lambda i: (0, 0)),
                  pl.BlockSpec((1, F), lambda i: (0, 0)),
                  pl.BlockSpec((F, D), lambda i: (0, 0)),
                  pl.BlockSpec((1, D), lambda i: (0, 0)),
                  pl.BlockSpec((1, D), lambda i: (0, 0)),
                  pl.BlockSpec((1, D), lambda i: (0, 0))],
        out_specs=pl.BlockSpec((tm, D), lambda i: (i, 0)),
        compiler_params=_parallel(),
    )(x2, w1, b1, w2, b2, g, beta)


def layer_norm(x2, g, b, eps=1e-5):
    M, D = x2.shape
    tm = _m_tile(M)
    return pl.pallas_call(
        functools.partial(_ln_kernel, eps=eps),
        out_shape=jax.ShapeDtypeStruct((M, D), x2.dtype),
        grid=(pl.cdiv(M, tm),),
        in_specs=[pl.BlockSpec((tm, D), lambda i: (i, 0)),
                  pl.BlockSpec((1, D), lambda i: (0, 0)),
                  pl.BlockSpec((1, D), lambda i: (0, 0))],
        out_specs=pl.BlockSpec((tm, D), lambda i: (i, 0)),
        compiler_params=_parallel(),
    )(x2, g, b)


def conv_layer(x, p):
    B, L, D = x.shape
    L_out = (L - 1) // 2 + 1
    # (C_out, C_in, 3) -> (3, C_in, C_out) -> (3*C_in, C_out) to match im2col columns
    w_flat = jnp.transpose(p["w"], (2, 1, 0)).reshape(3 * D, D)
    return pl.pallas_call(
        functools.partial(_conv_block_kernel, L=L, L_out=L_out, eps=1e-5),
        out_shape=jax.ShapeDtypeStruct((B, L_out, D), x.dtype),
        grid=(B,),
        in_specs=[pl.BlockSpec((1, L, D), lambda b: (b, 0, 0)),
                  pl.BlockSpec((3 * D, D), lambda b: (0, 0)),
                  pl.BlockSpec((1, D), lambda b: (0, 0)),
                  pl.BlockSpec((1, D), lambda b: (0, 0)),
                  pl.BlockSpec((1, D), lambda b: (0, 0)),
                  pl.BlockSpec((1, D), lambda b: (0, 0)),
                  pl.BlockSpec((1, D), lambda b: (0, 0))],
        out_specs=pl.BlockSpec((1, L_out, D), lambda b: (b, 0, 0)),
        scratch_shapes=[pltpu.VMEM((2 * L_out + 2, D), jnp.float32)],
        compiler_params=_parallel(),
    )(x, w_flat, p["b"], p["bn_g"], p["bn_b"], p["bn_mean"], p["bn_var"])


def encoder_layer(x, p, n_heads):
    """Informer EncoderLayer (relu activation, dropout=identity in eval)."""
    B, L, D = x.shape
    H = n_heads
    E = D // H
    M = B * L
    ap = p["attn"]
    x2 = x.reshape(M, D)

    # fused Q/K/V projection: x is read from HBM once, single matmul kernel
    qkv = fused_qkv(x2, ap["wqkv"], ap["bqkv"])                 # (M, 3D)
    qkv = qkv.reshape(B, L, 3, H, E)
    # TODO(synk): head split/merge uses an XLA transpose between kernels; folding
    # it into BlockSpecs would require lane-splitting for head_dim < 128.
    qkv = jnp.transpose(qkv, (2, 0, 3, 1, 4)).reshape(3, B * H, L, E)

    ctx, attn = attention(qkv[0], qkv[1], qkv[2], 1.0 / sqrt(E), x.dtype)
    attn = attn.reshape(B, H, L, L)
    ctx = jnp.transpose(ctx.reshape(B, H, L, E), (0, 2, 1, 3)).reshape(M, D)

    # x = norm1(x + out_proj(ctx))       (out-projection fused with residual+LN)
    xf = proj_residual_ln(x2, ctx, ap["wo"], ap["bo"], p["ln1_g"], p["ln1_b"])
    # out = norm2(xf + FFN(xf))          (single fused FFN kernel)
    out = ffn_residual_ln(xf, p["w1"], p["b1"], p["w2"], p["b2"],
                          p["ln2_g"], p["ln2_b"])
    return out.reshape(B, L, D), attn


def encoder_forward(x, params, n_heads):
    """Mirrors Encoder.forward (attn_mask=None path)."""
    attns = []
    attn_layers = params["attn_layers"]
    conv_layers = params.get("conv_layers")
    if conv_layers is not None:
        for al, cl in zip(attn_layers, conv_layers):
            x, attn = encoder_layer(x, al, n_heads)
            x = conv_layer(x, cl)
            attns.append(attn)
        x, attn = encoder_layer(x, attn_layers[-1], n_heads)
        attns.append(attn)
    else:
        for al in attn_layers:
            x, attn = encoder_layer(x, al, n_heads)
            attns.append(attn)
    if params.get("norm") is not None:
        B, L, D = x.shape
        x = layer_norm(x.reshape(B * L, D), params["norm"]["g"],
                       params["norm"]["b"]).reshape(B, L, D)
    return x, attns


# ---------------------------------------------------------------------------
# Deterministic parameter construction
# ---------------------------------------------------------------------------
def _lin_init(key, fan_in, fan_out):
    kw, kb = jax.random.split(key)
    w = jax.random.normal(kw, (fan_in, fan_out), jnp.float32) / sqrt(fan_in)
    b = jax.random.normal(kb, (1, fan_out), jnp.float32) * 0.01
    return w, b


def make_encoder_layer_params(key, d_model, d_ff):
    ks = jax.random.split(key, 6)
    wq, bq = _lin_init(ks[0], d_model, d_model)
    wk, bk = _lin_init(ks[1], d_model, d_model)
    wv, bv = _lin_init(ks[2], d_model, d_model)
    wo, bo = _lin_init(ks[3], d_model, d_model)
    w1, b1 = _lin_init(ks[4], d_model, d_ff)
    w2, b2 = _lin_init(ks[5], d_ff, d_model)
    ones = jnp.ones((1, d_model), jnp.float32)
    zeros = jnp.zeros((1, d_model), jnp.float32)
    return {
        "attn": {"wqkv": jnp.concatenate([wq, wk, wv], axis=1),
                 "bqkv": jnp.concatenate([bq, bk, bv], axis=1),
                 "wo": wo, "bo": bo},
        "ln1_g": ones, "ln1_b": zeros,
        "w1": w1, "b1": b1, "w2": w2, "b2": b2,
        "ln2_g": ones, "ln2_b": zeros,
    }


def make_conv_layer_params(key, d_model):
    kw, kb = jax.random.split(key)
    w = jax.random.normal(kw, (d_model, d_model, 3), jnp.float32) / sqrt(3 * d_model)
    b = jax.random.normal(kb, (1, d_model), jnp.float32) * 0.01
    return {"w": w, "b": b,
            "bn_g": jnp.ones((1, d_model), jnp.float32),
            "bn_b": jnp.zeros((1, d_model), jnp.float32),
            "bn_mean": jnp.zeros((1, d_model), jnp.float32),
            "bn_var": jnp.ones((1, d_model), jnp.float32)}


# ---------------------------------------------------------------------------
if __name__ == "__main__":
    B, L, D, H, d_ff = 2, 8, 32, 4, 64
    key = jax.random.PRNGKey(0)
    kx, kp = jax.random.split(key)
    x = jax.random.normal(kx, (B, L, D), jnp.float32)

    kl = jax.random.split(kp, 3)
    params = {
        "attn_layers": [make_encoder_layer_params(kl[0], D, d_ff),
                        make_encoder_layer_params(kl[1], D, d_ff)],
        "conv_layers": [make_conv_layer_params(kl[2], D)],
        "norm": {"g": jnp.ones((1, D), jnp.float32),
                 "b": jnp.zeros((1, D), jnp.float32)},
    }

    fwd = jax.jit(functools.partial(encoder_forward, n_heads=H))
    out, attns = fwd(x, params)
    jax.block_until_ready(out)
    for a in attns:
        jax.block_until_ready(a)

    L_down = (L - 1) // 2 + 1      # conv layer halves the sequence length
    assert out.shape == (B, L_down, D), out.shape
    assert attns[0].shape == (B, H, L, L)
    assert attns[1].shape == (B, H, L_down, L_down)
    assert bool(jnp.all(jnp.isfinite(out)))
    print("KERNEL_OK")
</pallas_src>

<mosaic_0001>
module attributes {stable_mosaic.version = 11 : i64} {
  func.func @_linear_kernel(%arg0: i32, %arg1: memref<16x32xf32, #tpu.memory_space<vmem>>, %arg2: memref<32x96xf32, #tpu.memory_space<vmem>>, %arg3: memref<1x96xf32, #tpu.memory_space<vmem>>, %arg4: memref<16x96xf32, #tpu.memory_space<vmem>>) attributes {dimension_semantics = [#tpu.dimension_semantics<parallel>], iteration_bounds = array<i64: 1>, scalar_prefetch = 0 : i64, scratch_operands = 0 : i64, tpu.core_type = #tpu.core_type<tc>, window_params = [{transform_indices = @transform_0, window_bounds = array<i64: 16, 32>}, {pipeline_mode = #tpu.pipeline_mode<synchronous>, transform_indices = @transform_1, window_bounds = array<i64: 32, 96>}, {pipeline_mode = #tpu.pipeline_mode<synchronous>, transform_indices = @transform_2, window_bounds = array<i64: 1, 96>}, {transform_indices = @transform_3, window_bounds = array<i64: 16, 96>}]} {
    %c0 = arith.constant 0 : index
    %c0_0 = arith.constant 0 : index
    %0 = vector.load %arg1[%c0, %c0_0] : memref<16x32xf32, #tpu.memory_space<vmem>>, vector<16x32xf32>
    %c0_1 = arith.constant 0 : index
    %c0_2 = arith.constant 0 : index
    %1 = vector.load %arg2[%c0_1, %c0_2] : memref<32x96xf32, #tpu.memory_space<vmem>>, vector<32x96xf32>
    %cst = arith.constant dense<0.000000e+00> : vector<16x96xf32>
    %2 = tpu.matmul %0, %1, %cst {dimension_numbers = #tpu.dot_dimension_numbers<[1], [0], [0], [1], [0, 0, 1, 1], [], []>} : vector<16x32xf32>, vector<32x96xf32>, vector<16x96xf32> -> vector<16x96xf32>
    %c0_3 = arith.constant 0 : index
    %c0_4 = arith.constant 0 : index
    %3 = vector.load %arg3[%c0_3, %c0_4] : memref<1x96xf32, #tpu.memory_space<vmem>>, vector<1x96xf32>
    %4 = vector.broadcast %3 : vector<1x96xf32> to vector<16x96xf32>
    %5 = arith.addf %2, %4 : vector<16x96xf32>
    %c0_5 = arith.constant 0 : index
    %c0_6 = arith.constant 0 : index
    %6 = vector.load %arg4[%c0_5, %c0_6] : memref<16x96xf32, #tpu.memory_space<vmem>>, vector<16x96xf32>
    tpu.vector_store %arg4[%c0_5, %c0_6], %5 {strides = array<i32>} : memref<16x96xf32, #tpu.memory_space<vmem>>, vector<16x96xf32>,
    return
  }
  func.func @transform_0(%arg0: i32) -> (i32, i32) {
    %c0_i32 = arith.constant 0 : i32
    %c0_i32_0 = arith.constant 0 : i32
    return %arg0, %c0_i32 : i32, i32
  }
  func.func @transform_1(%arg0: i32) -> (i32, i32) {
    %c0_i32 = arith.constant 0 : i32
    %c0_i32_0 = arith.constant 0 : i32
    %c0_i32_1 = arith.constant 0 : i32
    return %c0_i32, %c0_i32_0 : i32, i32
  }
  func.func @transform_2(%arg0: i32) -> (i32, i32) {
    %c0_i32 = arith.constant 0 : i32
    %c0_i32_0 = arith.constant 0 : i32
    %c0_i32_1 = arith.constant 0 : i32
    return %c0_i32, %c0_i32_0 : i32, i32
  }
  func.func @transform_3(%arg0: i32) -> (i32, i32) {
    %c0_i32 = arith.constant 0 : i32
    %c0_i32_0 = arith.constant 0 : i32
    return %arg0, %c0_i32 : i32, i32
  }
}

module attributes {stable_mosaic.version = 11 : i64} {
  func.func @_attention_kernel(%arg0: i32, %arg1: memref<1x8x8xf32, #tpu.memory_space<vmem>>, %arg2: memref<1x8x8xf32, #tpu.memory_space<vmem>>, %arg3: memref<1x8x8xf32, #tpu.memory_space<vmem>>, %arg4: memref<1x8x8xf32, #tpu.memory_space<vmem>>, %arg5: memref<1x8x8xf32, #tpu.memory_space<vmem>>) attributes {dimension_semantics = [#tpu.dimension_semantics<parallel>], iteration_bounds = array<i64: 8>, scalar_prefetch = 0 : i64, scratch_operands = 0 : i64, tpu.core_type = #tpu.core_type<tc>, window_params = [{transform_indices = @transform_0, window_bounds = array<i64: 1, 8, 8>}, {transform_indices = @transform_1, window_bounds = array<i64: 1, 8, 8>}, {transform_indices = @transform_2, window_bounds = array<i64: 1, 8, 8>}, {transform_indices = @transform_3, window_bounds = array<i64: 1, 8, 8>}, {transform_indices = @transform_4, window_bounds = array<i64: 1, 8, 8>}]} {
    %c0 = arith.constant 0 : index
    %c0_0 = arith.constant 0 : index
    %c0_1 = arith.constant 0 : index
    %0 = vector.load %arg1[%c0, %c0_0, %c0_1] : memref<1x8x8xf32, #tpu.memory_space<vmem>>, vector<1x8x8xf32>
    %1 = vector.shape_cast %0 : vector<1x8x8xf32> to vector<8x8xf32>
    %cst = arith.constant 0.353553385 : f32
    %2 = vector.broadcast %cst : f32 to vector<8x8xf32>
    %3 = arith.mulf %1, %2 : vector<8x8xf32>
    %c0_2 = arith.constant 0 : index
    %c0_3 = arith.constant 0 : index
    %c0_4 = arith.constant 0 : index
    %4 = vector.load %arg2[%c0_2, %c0_3, %c0_4] : memref<1x8x8xf32, #tpu.memory_space<vmem>>, vector<1x8x8xf32>
    %5 = vector.shape_cast %4 : vector<1x8x8xf32> to vector<8x8xf32>
    %c0_5 = arith.constant 0 : index
    %c0_6 = arith.constant 0 : index
    %c0_7 = arith.constant 0 : index
    %6 = vector.load %arg3[%c0_5, %c0_6, %c0_7] : memref<1x8x8xf32, #tpu.memory_space<vmem>>, vector<1x8x8xf32>
    %7 = vector.shape_cast %6 : vector<1x8x8xf32> to vector<8x8xf32>
    %8 = tpu.transpose %5, [1, 0] : vector<8x8xf32> -> vector<8x8xf32>
    %cst_8 = arith.constant dense<0.000000e+00> : vector<8x8xf32>
    %9 = tpu.matmul %3, %8, %cst_8 {dimension_numbers = #tpu.dot_dimension_numbers<[1], [0], [0], [1], [0, 0, 1, 1], [], []>} : vector<8x8xf32>, vector<8x8xf32>, vector<8x8xf32> -> vector<8x8xf32>
    %cst_9 = arith.constant dense<0xFF800000> : vector<8xf32>
    %10 = vector.multi_reduction <maximumf>, %9, %cst_9 [1] : vector<8x8xf32> to vector<8xf32>
    %11 = vector.shape_cast %10 : vector<8xf32> to vector<8x1xf32>
    %12 = vector.broadcast %11 : vector<8x1xf32> to vector<8x8xf32>
    %13 = arith.subf %9, %12 : vector<8x8xf32>
    %14 = math.exp %13 : vector<8x8xf32>
    %cst_10 = arith.constant dense<0.000000e+00> : vector<8xf32>
    %15 = vector.multi_reduction <add>, %14, %cst_10 [1] : vector<8x8xf32> to vector<8xf32>
    %16 = vector.shape_cast %15 : vector<8xf32> to vector<8x1xf32>
    %17 = tpu.reciprocal %16 {approx = true} : vector<8x1xf32> -> vector<8x1xf32>
    %18 = vector.broadcast %17 : vector<8x1xf32> to vector<8x8xf32>
    %19 = arith.mulf %14, %18 : vector<8x8xf32>
    %cst_11 = arith.constant dense<0.000000e+00> : vector<8x8xf32>
    %20 = tpu.matmul %19, %7, %cst_11 {dimension_numbers = #tpu.dot_dimension_numbers<[1], [0], [0], [1], [0, 0, 1, 1], [], []>} : vector<8x8xf32>, vector<8x8xf32>, vector<8x8xf32> -> vector<8x8xf32>
    %c0_12 = arith.constant 0 : index
    %c0_13 = arith.constant 0 : index
    %c0_14 = arith.constant 0 : index
    %21 = vector.load %arg4[%c0_12, %c0_13, %c0_14] : memref<1x8x8xf32, #tpu.memory_space<vmem>>, vector<1x8x8xf32>
    %22 = vector.shape_cast %21 : vector<1x8x8xf32> to vector<8x8xf32>
    %23 = vector.shape_cast %20 : vector<8x8xf32> to vector<1x8x8xf32>
    tpu.vector_store %arg4[%c0_12, %c0_13, %c0_14], %23 {strides = array<i32>} : memref<1x8x8xf32, #tpu.memory_space<vmem>>, vector<1x8x8xf32>,
    %c0_15 = arith.constant 0 : index
    %c0_16 = arith.constant 0 : index
    %c0_17 = arith.constant 0 : index
    %24 = vector.load %arg5[%c0_15, %c0_16, %c0_17] : memref<1x8x8xf32, #tpu.memory_space<vmem>>, vector<1x8x8xf32>
    %25 = vector.shape_cast %24 : vector<1x8x8xf32> to vector<8x8xf32>
    %26 = vector.shape_cast %19 : vector<8x8xf32> to vector<1x8x8xf32>
    tpu.vector_store %arg5[%c0_15, %c0_16, %c0_17], %26 {strides = array<i32>} : memref<1x8x8xf32, #tpu.memory_space<vmem>>, vector<1x8x8xf32>,
    return
  }
  func.func @transform_0(%arg0: i32) -> (i32, i32, i32) {
    %c0_i32 = arith.constant 0 : i32
    %c0_i32_0 = arith.constant 0 : i32
    %c0_i32_1 = arith.constant 0 : i32
    return %arg0, %c0_i32, %c0_i32_0 : i32, i32, i32
  }
  func.func @transform_1(%arg0: i32) -> (i32, i32, i32) {
    %c0_i32 = arith.constant 0 : i32
    %c0_i32_0 = arith.constant 0 : i32
    %c0_i32_1 = arith.constant 0 : i32
    return %arg0, %c0_i32, %c0_i32_0 : i32, i32, i32
  }
  func.func @transform_2(%arg0: i32) -> (i32, i32, i32) {
    %c0_i32 = arith.constant 0 : i32
    %c0_i32_0 = arith.constant 0 : i32
    %c0_i32_1 = arith.constant 0 : i32
    return %arg0, %c0_i32, %c0_i32_0 : i32, i32, i32
  }
  func.func @transform_3(%arg0: i32) -> (i32, i32, i32) {
    %c0_i32 = arith.constant 0 : i32
    %c0_i32_0 = arith.constant 0 : i32
    %c0_i32_1 = arith.constant 0 : i32
    return %arg0, %c0_i32, %c0_i32_0 : i32, i32, i32
  }
  func.func @transform_4(%arg0: i32) -> (i32, i32, i32) {
    %c0_i32 = arith.constant 0 : i32
    %c0_i32_0 = arith.constant 0 : i32
    %c0_i32_1 = arith.constant 0 : i32
    return %arg0, %c0_i32, %c0_i32_0 : i32, i32, i32
  }
}

module attributes {stable_mosaic.version = 11 : i64} {
  func.func @_proj_residual_ln_kernel(%arg0: i32, %arg1: memref<16x32xf32, #tpu.memory_space<vmem>>, %arg2: memref<16x32xf32, #tpu.memory_space<vmem>>, %arg3: memref<32x32xf32, #tpu.memory_space<vmem>>, %arg4: memref<1x32xf32, #tpu.memory_space<vmem>>, %arg5: memref<1x32xf32, #tpu.memory_space<vmem>>, %arg6: memref<1x32xf32, #tpu.memory_space<vmem>>, %arg7: memref<16x32xf32, #tpu.memory_space<vmem>>) attributes {dimension_semantics = [#tpu.dimension_semantics<parallel>], iteration_bounds = array<i64: 1>, scalar_prefetch = 0 : i64, scratch_operands = 0 : i64, tpu.core_type = #tpu.core_type<tc>, window_params = [{transform_indices = @transform_0, window_bounds = array<i64: 16, 32>}, {transform_indices = @transform_1, window_bounds = array<i64: 16, 32>}, {pipeline_mode = #tpu.pipeline_mode<synchronous>, transform_indices = @transform_2, window_bounds = array<i64: 32, 32>}, {pipeline_mode = #tpu.pipeline_mode<synchronous>, transform_indices = @transform_3, window_bounds = array<i64: 1, 32>}, {pipeline_mode = #tpu.pipeline_mode<synchronous>, transform_indices = @transform_4, window_bounds = array<i64: 1, 32>}, {pipeline_mode = #tpu.pipeline_mode<synchronous>, transform_indices = @transform_5, window_bounds = array<i64: 1, 32>}, {transform_indices = @transform_6, window_bounds = array<i64: 16, 32>}]} {
    %c0 = arith.constant 0 : index
    %c0_0 = arith.constant 0 : index
    %0 = vector.load %arg2[%c0, %c0_0] : memref<16x32xf32, #tpu.memory_space<vmem>>, vector<16x32xf32>
    %c0_1 = arith.constant 0 : index
    %c0_2 = arith.constant 0 : index
    %1 = vector.load %arg3[%c0_1, %c0_2] : memref<32x32xf32, #tpu.memory_space<vmem>>, vector<32x32xf32>
    %cst = arith.constant dense<0.000000e+00> : vector<16x32xf32>
    %2 = tpu.matmul %0, %1, %cst {dimension_numbers = #tpu.dot_dimension_numbers<[1], [0], [0], [1], [0, 0, 1, 1], [], []>} : vector<16x32xf32>, vector<32x32xf32>, vector<16x32xf32> -> vector<16x32xf32>
    %c0_3 = arith.constant 0 : index
    %c0_4 = arith.constant 0 : index
    %3 = vector.load %arg4[%c0_3, %c0_4] : memref<1x32xf32, #tpu.memory_space<vmem>>, vector<1x32xf32>
    %4 = vector.broadcast %3 : vector<1x32xf32> to vector<16x32xf32>
    %5 = arith.addf %2, %4 : vector<16x32xf32>
    %c0_5 = arith.constant 0 : index
    %c0_6 = arith.constant 0 : index
    %6 = vector.load %arg1[%c0_5, %c0_6] : memref<16x32xf32, #tpu.memory_space<vmem>>, vector<16x32xf32>
    %7 = arith.addf %6, %5 : vector<16x32xf32>
    %cst_7 = arith.constant dense<0.000000e+00> : vector<16xf32>
    %8 = vector.multi_reduction <add>, %7, %cst_7 [1] : vector<16x32xf32> to vector<16xf32>
    %9 = vector.shape_cast %8 : vector<16xf32> to vector<16x1xf32>
    %cst_8 = arith.constant 3.200000e+01 : f32
    %10 = vector.broadcast %cst_8 : f32 to vector<16x1xf32>
    %11 = arith.divf %9, %10 : vector<16x1xf32>
    %12 = vector.broadcast %11 : vector<16x1xf32> to vector<16x32xf32>
    %13 = arith.subf %7, %12 : vector<16x32xf32>
    %14 = arith.mulf %13, %13 : vector<16x32xf32>
    %cst_9 = arith.constant dense<0.000000e+00> : vector<16xf32>
    %15 = vector.multi_reduction <add>, %14, %cst_9 [1] : vector<16x32xf32> to vector<16xf32>
    %16 = vector.shape_cast %15 : vector<16xf32> to vector<16x1xf32>
    %cst_10 = arith.constant 3.200000e+01 : f32
    %17 = vector.broadcast %cst_10 : f32 to vector<16x1xf32>
    %18 = arith.divf %16, %17 : vector<16x1xf32>
    %19 = vector.broadcast %11 : vector<16x1xf32> to vector<16x32xf32>
    %20 = arith.subf %7, %19 : vector<16x32xf32>
    %cst_11 = arith.constant 9.99999974E-6 : f32
    %21 = vector.broadcast %cst_11 : f32 to vector<16x1xf32>
    %22 = arith.addf %18, %21 : vector<16x1xf32>
    %23 = math.rsqrt %22 : vector<16x1xf32>
    %24 = vector.broadcast %23 : vector<16x1xf32> to vector<16x32xf32>
    %25 = arith.mulf %20, %24 : vector<16x32xf32>
    %c0_12 = arith.constant 0 : index
    %c0_13 = arith.constant 0 : index
    %26 = vector.load %arg5[%c0_12, %c0_13] : memref<1x32xf32, #tpu.memory_space<vmem>>, vector<1x32xf32>
    %27 = vector.broadcast %26 : vector<1x32xf32> to vector<16x32xf32>
    %28 = arith.mulf %25, %27 : vector<16x32xf32>
    %c0_14 = arith.constant 0 : index
    %c0_15 = arith.constant 0 : index
    %29 = vector.load %arg6[%c0_14, %c0_15] : memref<1x32xf32, #tpu.memory_space<vmem>>, vector<1x32xf32>
    %30 = vector.broadcast %29 : vector<1x32xf32> to vector<16x32xf32>
    %31 = arith.addf %28, %30 : vector<16x32xf32>
    %c0_16 = arith.constant 0 : index
    %c0_17 = arith.constant 0 : index
    %32 = vector.load %arg7[%c0_16, %c0_17] : memref<16x32xf32, #tpu.memory_space<vmem>>, vector<16x32xf32>
    tpu.vector_store %arg7[%c0_16, %c0_17], %31 {strides = array<i32>} : memref<16x32xf32, #tpu.memory_space<vmem>>, vector<16x32xf32>,
    return
  }
  func.func @transform_0(%arg0: i32) -> (i32, i32) {
    %c0_i32 = arith.constant 0 : i32
    %c0_i32_0 = arith.constant 0 : i32
    return %arg0, %c0_i32 : i32, i32
  }
  func.func @transform_1(%arg0: i32) -> (i32, i32) {
    %c0_i32 = arith.constant 0 : i32
    %c0_i32_0 = arith.constant 0 : i32
    return %arg0, %c0_i32 : i32, i32
  }
  func.func @transform_2(%arg0: i32) -> (i32, i32) {
    %c0_i32 = arith.constant 0 : i32
    %c0_i32_0 = arith.constant 0 : i32
    %c0_i32_1 = arith.constant 0 : i32
    return %c0_i32, %c0_i32_0 : i32, i32
  }
  func.func @transform_3(%arg0: i32) -> (i32, i32) {
    %c0_i32 = arith.constant 0 : i32
    %c0_i32_0 = arith.constant 0 : i32
    %c0_i32_1 = arith.constant 0 : i32
    return %c0_i32, %c0_i32_0 : i32, i32
  }
  func.func @transform_4(%arg0: i32) -> (i32, i32) {
    %c0_i32 = arith.constant 0 : i32
    %c0_i32_0 = arith.constant 0 : i32
    %c0_i32_1 = arith.constant 0 : i32
    return %c0_i32, %c0_i32_0 : i32, i32
  }
  func.func @transform_5(%arg0: i32) -> (i32, i32) {
    %c0_i32 = arith.constant 0 : i32
    %c0_i32_0 = arith.constant 0 : i32
    %c0_i32_1 = arith.constant 0 : i32
    return %c0_i32, %c0_i32_0 : i32, i32
  }
  func.func @transform_6(%arg0: i32) -> (i32, i32) {
    %c0_i32 = arith.constant 0 : i32
    %c0_i32_0 = arith.constant 0 : i32
    return %arg0, %c0_i32 : i32, i32
  }
}

module attributes {stable_mosaic.version = 11 : i64} {
  func.func @_ffn_residual_ln_kernel(%arg0: i32, %arg1: memref<16x32xf32, #tpu.memory_space<vmem>>, %arg2: memref<32x64xf32, #tpu.memory_space<vmem>>, %arg3: memref<1x64xf32, #tpu.memory_space<vmem>>, %arg4: memref<64x32xf32, #tpu.memory_space<vmem>>, %arg5: memref<1x32xf32, #tpu.memory_space<vmem>>, %arg6: memref<1x32xf32, #tpu.memory_space<vmem>>, %arg7: memref<1x32xf32, #tpu.memory_space<vmem>>, %arg8: memref<16x32xf32, #tpu.memory_space<vmem>>) attributes {dimension_semantics = [#tpu.dimension_semantics<parallel>], iteration_bounds = array<i64: 1>, scalar_prefetch = 0 : i64, scratch_operands = 0 : i64, tpu.core_type = #tpu.core_type<tc>, window_params = [{transform_indices = @transform_0, window_bounds = array<i64: 16, 32>}, {pipeline_mode = #tpu.pipeline_mode<synchronous>, transform_indices = @transform_1, window_bounds = array<i64: 32, 64>}, {pipeline_mode = #tpu.pipeline_mode<synchronous>, transform_indices = @transform_2, window_bounds = array<i64: 1, 64>}, {pipeline_mode = #tpu.pipeline_mode<synchronous>, transform_indices = @transform_3, window_bounds = array<i64: 64, 32>}, {pipeline_mode = #tpu.pipeline_mode<synchronous>, transform_indices = @transform_4, window_bounds = array<i64: 1, 32>}, {pipeline_mode = #tpu.pipeline_mode<synchronous>, transform_indices = @transform_5, window_bounds = array<i64: 1, 32>}, {pipeline_mode = #tpu.pipeline_mode<synchronous>, transform_indices = @transform_6, window_bounds = array<i64: 1, 32>}, {transform_indices = @transform_7, window_bounds = array<i64: 16, 32>}]} {
    %c0 = arith.constant 0 : index
    %c0_0 = arith.constant 0 : index
    %0 = vector.load %arg1[%c0, %c0_0] : memref<16x32xf32, #tpu.memory_space<vmem>>, vector<16x32xf32>
    %c0_1 = arith.constant 0 : index
    %c0_2 = arith.constant 0 : index
    %1 = vector.load %arg2[%c0_1, %c0_2] : memref<32x64xf32, #tpu.memory_space<vmem>>, vector<32x64xf32>
    %cst = arith.constant dense<0.000000e+00> : vector<16x64xf32>
    %2 = tpu.matmul %0, %1, %cst {dimension_numbers = #tpu.dot_dimension_numbers<[1], [0], [0], [1], [0, 0, 1, 1], [], []>} : vector<16x32xf32>, vector<32x64xf32>, vector<16x64xf32> -> vector<16x64xf32>
    %c0_3 = arith.constant 0 : index
    %c0_4 = arith.constant 0 : index
    %3 = vector.load %arg3[%c0_3, %c0_4] : memref<1x64xf32, #tpu.memory_space<vmem>>, vector<1x64xf32>
    %4 = vector.broadcast %3 : vector<1x64xf32> to vector<16x64xf32>
    %5 = arith.addf %2, %4 : vector<16x64xf32>
    %cst_5 = arith.constant 0.000000e+00 : f32
    %6 = vector.broadcast %cst_5 : f32 to vector<16x64xf32>
    %7 = arith.maximumf %5, %6 : vector<16x64xf32>
    %c0_6 = arith.constant 0 : index
    %c0_7 = arith.constant 0 : index
    %8 = vector.load %arg4[%c0_6, %c0_7] : memref<64x32xf32, #tpu.memory_space<vmem>>, vector<64x32xf32>
    %cst_8 = arith.constant dense<0.000000e+00> : vector<16x32xf32>
    %9 = tpu.matmul %7, %8, %cst_8 {dimension_numbers = #tpu.dot_dimension_numbers<[1], [0], [0], [1], [0, 0, 1, 1], [], []>} : vector<16x64xf32>, vector<64x32xf32>, vector<16x32xf32> -> vector<16x32xf32>
    %c0_9 = arith.constant 0 : index
    %c0_10 = arith.constant 0 : index
    %10 = vector.load %arg5[%c0_9, %c0_10] : memref<1x32xf32, #tpu.memory_space<vmem>>, vector<1x32xf32>
    %11 = vector.broadcast %10 : vector<1x32xf32> to vector<16x32xf32>
    %12 = arith.addf %9, %11 : vector<16x32xf32>
    %13 = arith.addf %0, %12 : vector<16x32xf32>
    %cst_11 = arith.constant dense<0.000000e+00> : vector<16xf32>
    %14 = vector.multi_reduction <add>, %13, %cst_11 [1] : vector<16x32xf32> to vector<16xf32>
    %15 = vector.shape_cast %14 : vector<16xf32> to vector<16x1xf32>
    %cst_12 = arith.constant 3.200000e+01 : f32
    %16 = vector.broadcast %cst_12 : f32 to vector<16x1xf32>
    %17 = arith.divf %15, %16 : vector<16x1xf32>
    %18 = vector.broadcast %17 : vector<16x1xf32> to vector<16x32xf32>
    %19 = arith.subf %13, %18 : vector<16x32xf32>
    %20 = arith.mulf %19, %19 : vector<16x32xf32>
    %cst_13 = arith.constant dense<0.000000e+00> : vector<16xf32>
    %21 = vector.multi_reduction <add>, %20, %cst_13 [1] : vector<16x32xf32> to vector<16xf32>
    %22 = vector.shape_cast %21 : vector<16xf32> to vector<16x1xf32>
    %cst_14 = arith.constant 3.200000e+01 : f32
    %23 = vector.broadcast %cst_14 : f32 to vector<16x1xf32>
    %24 = arith.divf %22, %23 : vector<16x1xf32>
    %25 = vector.broadcast %17 : vector<16x1xf32> to vector<16x32xf32>
    %26 = arith.subf %13, %25 : vector<16x32xf32>
    %cst_15 = arith.constant 9.99999974E-6 : f32
    %27 = vector.broadcast %cst_15 : f32 to vector<16x1xf32>
    %28 = arith.addf %24, %27 : vector<16x1xf32>
    %29 = math.rsqrt %28 : vector<16x1xf32>
    %30 = vector.broadcast %29 : vector<16x1xf32> to vector<16x32xf32>
    %31 = arith.mulf %26, %30 : vector<16x32xf32>
    %c0_16 = arith.constant 0 : index
    %c0_17 = arith.constant 0 : index
    %32 = vector.load %arg6[%c0_16, %c0_17] : memref<1x32xf32, #tpu.memory_space<vmem>>, vector<1x32xf32>
    %33 = vector.broadcast %32 : vector<1x32xf32> to vector<16x32xf32>
    %34 = arith.mulf %31, %33 : vector<16x32xf32>
    %c0_18 = arith.constant 0 : index
    %c0_19 = arith.constant 0 : index
    %35 = vector.load %arg7[%c0_18, %c0_19] : memref<1x32xf32, #tpu.memory_space<vmem>>, vector<1x32xf32>
    %36 = vector.broadcast %35 : vector<1x32xf32> to vector<16x32xf32>
    %37 = arith.addf %34, %36 : vector<16x32xf32>
    %c0_20 = arith.constant 0 : index
    %c0_21 = arith.constant 0 : index
    %38 = vector.load %arg8[%c0_20, %c0_21] : memref<16x32xf32, #tpu.memory_space<vmem>>, vector<16x32xf32>
    tpu.vector_store %arg8[%c0_20, %c0_21], %37 {strides = array<i32>} : memref<16x32xf32, #tpu.memory_space<vmem>>, vector<16x32xf32>,
    return
  }
  func.func @transform_0(%arg0: i32) -> (i32, i32) {
    %c0_i32 = arith.constant 0 : i32
    %c0_i32_0 = arith.constant 0 : i32
    return %arg0, %c0_i32 : i32, i32
  }
  func.func @transform_1(%arg0: i32) -> (i32, i32) {
    %c0_i32 = arith.constant 0 : i32
    %c0_i32_0 = arith.constant 0 : i32
    %c0_i32_1 = arith.constant 0 : i32
    return %c0_i32, %c0_i32_0 : i32, i32
  }
  func.func @transform_2(%arg0: i32) -> (i32, i32) {
    %c0_i32 = arith.constant 0 : i32
    %c0_i32_0 = arith.constant 0 : i32
    %c0_i32_1 = arith.constant 0 : i32
    return %c0_i32, %c0_i32_0 : i32, i32
  }
  func.func @transform_3(%arg0: i32) -> (i32, i32) {
    %c0_i32 = arith.constant 0 : i32
    %c0_i32_0 = arith.constant 0 : i32
    %c0_i32_1 = arith.constant 0 : i32
    return %c0_i32, %c0_i32_0 : i32, i32
  }
  func.func @transform_4(%arg0: i32) -> (i32, i32) {
    %c0_i32 = arith.constant 0 : i32
    %c0_i32_0 = arith.constant 0 : i32
    %c0_i32_1 = arith.constant 0 : i32
    return %c0_i32, %c0_i32_0 : i32, i32
  }
  func.func @transform_5(%arg0: i32) -> (i32, i32) {
    %c0_i32 = arith.constant 0 : i32
    %c0_i32_0 = arith.constant 0 : i32
    %c0_i32_1 = arith.constant 0 : i32
    return %c0_i32, %c0_i32_0 : i32, i32
  }
  func.func @transform_6(%arg0: i32) -> (i32, i32) {
    %c0_i32 = arith.constant 0 : i32
    %c0_i32_0 = arith.constant 0 : i32
    %c0_i32_1 = arith.constant 0 : i32
    return %c0_i32, %c0_i32_0 : i32, i32
  }
  func.func @transform_7(%arg0: i32) -> (i32, i32) {
    %c0_i32 = arith.constant 0 : i32
    %c0_i32_0 = arith.constant 0 : i32
    return %arg0, %c0_i32 : i32, i32
  }
}

module attributes {stable_mosaic.version = 11 : i64} {
  func.func @_conv_block_kernel(%arg0: i32, %arg1: memref<1x8x32xf32, #tpu.memory_space<vmem>>, %arg2: memref<96x32xf32, #tpu.memory_space<vmem>>, %arg3: memref<1x32xf32, #tpu.memory_space<vmem>>, %arg4: memref<1x32xf32, #tpu.memory_space<vmem>>, %arg5: memref<1x32xf32, #tpu.memory_space<vmem>>, %arg6: memref<1x32xf32, #tpu.memory_space<vmem>>, %arg7: memref<1x32xf32, #tpu.memory_space<vmem>>, %arg8: memref<1x4x32xf32, #tpu.memory_space<vmem>>, %arg9: memref<10x32xf32, #tpu.memory_space<vmem>>) attributes {dimension_semantics = [#tpu.dimension_semantics<parallel>], iteration_bounds = array<i64: 2>, scalar_prefetch = 0 : i64, scratch_operands = 1 : i64, tpu.core_type = #tpu.core_type<tc>, window_params = [{transform_indices = @transform_0, window_bounds = array<i64: 1, 8, 32>}, {pipeline_mode = #tpu.pipeline_mode<synchronous>, transform_indices = @transform_1, window_bounds = array<i64: 96, 32>}, {pipeline_mode = #tpu.pipeline_mode<synchronous>, transform_indices = @transform_2, window_bounds = array<i64: 1, 32>}, {pipeline_mode = #tpu.pipeline_mode<synchronous>, transform_indices = @transform_3, window_bounds = array<i64: 1, 32>}, {pipeline_mode = #tpu.pipeline_mode<synchronous>, transform_indices = @transform_4, window_bounds = array<i64: 1, 32>}, {pipeline_mode = #tpu.pipeline_mode<synchronous>, transform_indices = @transform_5, window_bounds = array<i64: 1, 32>}, {pipeline_mode = #tpu.pipeline_mode<synchronous>, transform_indices = @transform_6, window_bounds = array<i64: 1, 32>}, {transform_indices = @transform_7, window_bounds = array<i64: 1, 4, 32>}]} {
    %c0 = arith.constant 0 : index
    %c0_0 = arith.constant 0 : index
    %c0_1 = arith.constant 0 : index
    %0 = vector.load %arg1[%c0, %c0_0, %c0_1] : memref<1x8x32xf32, #tpu.memory_space<vmem>>, vector<1x8x32xf32>
    %1 = vector.shape_cast %0 : vector<1x8x32xf32> to vector<8x32xf32>
    %2 = vector.extract_strided_slice %1 {offsets = [7, 0], sizes = [1, 32], strides = [1, 1]} : vector<8x32xf32> to vector<1x32xf32>
    %3 = vector.extract_strided_slice %1 {offsets = [0, 0], sizes = [7, 32], strides = [1, 1]} : vector<8x32xf32> to vector<7x32xf32>
    %4 = tpu.concatenate %2, %3 in 0 : vector<1x32xf32>, vector<7x32xf32> -> vector<8x32xf32>
    %5 = vector.extract_strided_slice %1 {offsets = [1, 0], sizes = [7, 32], strides = [1, 1]} : vector<8x32xf32> to vector<7x32xf32>
    %6 = vector.extract_strided_slice %1 {offsets = [0, 0], sizes = [1, 32], strides = [1, 1]} : vector<8x32xf32> to vector<1x32xf32>
    %7 = tpu.concatenate %5, %6 in 0 : vector<7x32xf32>, vector<1x32xf32> -> vector<8x32xf32>
    %8 = tpu.concatenate %4, %1, %7 in 1 : vector<8x32xf32>, vector<8x32xf32>, vector<8x32xf32> -> vector<8x96xf32>
    %c0_2 = arith.constant 0 : index
    %c0_3 = arith.constant 0 : index
    %9 = vector.load %arg2[%c0_2, %c0_3] : memref<96x32xf32, #tpu.memory_space<vmem>>, vector<96x32xf32>
    %cst = arith.constant dense<0.000000e+00> : vector<8x32xf32>
    %10 = tpu.matmul %8, %9, %cst {dimension_numbers = #tpu.dot_dimension_numbers<[1], [0], [0], [1], [0, 0, 1, 1], [], []>} : vector<8x96xf32>, vector<96x32xf32>, vector<8x32xf32> -> vector<8x32xf32>
    %c0_4 = arith.constant 0 : index
    %c0_5 = arith.constant 0 : index
    %11 = vector.load %arg3[%c0_4, %c0_5] : memref<1x32xf32, #tpu.memory_space<vmem>>, vector<1x32xf32>
    %12 = vector.broadcast %11 : vector<1x32xf32> to vector<8x32xf32>
    %13 = arith.addf %10, %12 : vector<8x32xf32>
    %c0_6 = arith.constant 0 : index
    %c0_7 = arith.constant 0 : index
    %14 = vector.load %arg6[%c0_6, %c0_7] : memref<1x32xf32, #tpu.memory_space<vmem>>, vector<1x32xf32>
    %15 = vector.broadcast %14 : vector<1x32xf32> to vector<8x32xf32>
    %16 = arith.subf %13, %15 : vector<8x32xf32>
    %c0_8 = arith.constant 0 : index
    %c0_9 = arith.constant 0 : index
    %17 = vector.load %arg7[%c0_8, %c0_9] : memref<1x32xf32, #tpu.memory_space<vmem>>, vector<1x32xf32>
    %cst_10 = arith.constant 9.99999974E-6 : f32
    %18 = vector.broadcast %cst_10 : f32 to vector<1x32xf32>
    %19 = arith.addf %17, %18 : vector<1x32xf32>
    %20 = math.rsqrt %19 : vector<1x32xf32>
    %21 = vector.broadcast %20 : vector<1x32xf32> to vector<8x32xf32>
    %22 = arith.mulf %16, %21 : vector<8x32xf32>
    %c0_11 = arith.constant 0 : index
    %c0_12 = arith.constant 0 : index
    %23 = vector.load %arg4[%c0_11, %c0_12] : memref<1x32xf32, #tpu.memory_space<vmem>>, vector<1x32xf32>
    %24 = vector.broadcast %23 : vector<1x32xf32> to vector<8x32xf32>
    %25 = arith.mulf %22, %24 : vector<8x32xf32>
    %c0_13 = arith.constant 0 : index
    %c0_14 = arith.constant 0 : index
    %26 = vector.load %arg5[%c0_13, %c0_14] : memref<1x32xf32, #tpu.memory_space<vmem>>, vector<1x32xf32>
    %27 = vector.broadcast %26 : vector<1x32xf32> to vector<8x32xf32>
    %28 = arith.addf %25, %27 : vector<8x32xf32>
    %cst_15 = arith.constant 0.000000e+00 : f32
    %29 = vector.broadcast %cst_15 : f32 to vector<8x32xf32>
    %30 = arith.cmpf ogt, %28, %29 : vector<8x32xf32>
    %cst_16 = arith.constant 0.000000e+00 : f32
    %31 = vector.broadcast %cst_16 : f32 to vector<8x32xf32>
    %32 = arith.minimumf %28, %31 : vector<8x32xf32>
    %33 = math.exp %32 : vector<8x32xf32>
    %cst_17 = arith.constant 1.000000e+00 : f32
    %34 = vector.broadcast %cst_17 : f32 to vector<8x32xf32>
    %35 = arith.subf %33, %34 : vector<8x32xf32>
    %36 = arith.select %30, %28, %35 : vector<8x32xi1>, vector<8x32xf32>
    %cst_18 = arith.constant 0xFF800000 : f32
    %37 = vector.broadcast %cst_18 : f32 to vector<10x32xf32>
    %c0_19 = arith.constant 0 : index
    %c0_20 = arith.constant 0 : index
    %38 = vector.load %arg9[%c0_19, %c0_20] : memref<10x32xf32, #tpu.memory_space<vmem>>, vector<10x32xf32>
    tpu.vector_store %arg9[%c0_19, %c0_20], %37 {strides = array<i32>} : memref<10x32xf32, #tpu.memory_space<vmem>>, vector<10x32xf32>,
    %c1 = arith.constant 1 : index
    %c0_21 = arith.constant 0 : index
    %39 = vector.load %arg9[%c1, %c0_21] : memref<10x32xf32, #tpu.memory_space<vmem>>, vector<8x32xf32>
    tpu.vector_store %arg9[%c1, %c0_21], %36 {strides = array<i32>} : memref<10x32xf32, #tpu.memory_space<vmem>>, vector<8x32xf32>,
    %c0_22 = arith.constant 0 : index
    %c0_23 = arith.constant 0 : index
    %40 = tpu.strided_load %arg9[%c0_22, %c0_23] {strides = array<i32: 2, 1>} : memref<10x32xf32, #tpu.memory_space<vmem>>, vector<4x32xf32>
    %c1_24 = arith.constant 1 : index
    %c0_25 = arith.constant 0 : index
    %41 = tpu.strided_load %arg9[%c1_24, %c0_25] {strides = array<i32: 2, 1>} : memref<10x32xf32, #tpu.memory_space<vmem>>, vector<4x32xf32>
    %c2 = arith.constant 2 : index
    %c0_26 = arith.constant 0 : index
    %42 = tpu.strided_load %arg9[%c2, %c0_26] {strides = array<i32: 2, 1>} : memref<10x32xf32, #tpu.memory_space<vmem>>, vector<4x32xf32>
    %43 = arith.maximumf %40, %41 : vector<4x32xf32>
    %44 = arith.maximumf %43, %42 : vector<4x32xf32>
    %c0_27 = arith.constant 0 : index
    %c0_28 = arith.constant 0 : index
    %c0_29 = arith.constant 0 : index
    %45 = vector.load %arg8[%c0_27, %c0_28, %c0_29] : memref<1x4x32xf32, #tpu.memory_space<vmem>>, vector<1x4x32xf32>
    %46 = vector.shape_cast %45 : vector<1x4x32xf32> to vector<4x32xf32>
    %47 = vector.shape_cast %44 : vector<4x32xf32> to vector<1x4x32xf32>
    tpu.vector_store %arg8[%c0_27, %c0_28, %c0_29], %47 {strides = array<i32>} : memref<1x4x32xf32, #tpu.memory_space<vmem>>, vector<1x4x32xf32>,
    return
  }
  func.func @transform_0(%arg0: i32) -> (i32, i32, i32) {
    %c0_i32 = arith.constant 0 : i32
    %c0_i32_0 = arith.constant 0 : i32
    %c0_i32_1 = arith.constant 0 : i32
    return %arg0, %c0_i32, %c0_i32_0 : i32, i32, i32
  }
  func.func @transform_1(%arg0: i32) -> (i32, i32) {
    %c0_i32 = arith.constant 0 : i32
    %c0_i32_0 = arith.constant 0 : i32
    %c0_i32_1 = arith.constant 0 : i32
    return %c0_i32, %c0_i32_0 : i32, i32
  }
  func.func @transform_2(%arg0: i32) -> (i32, i32) {
    %c0_i32 = arith.constant 0 : i32
    %c0_i32_0 = arith.constant 0 : i32
    %c0_i32_1 = arith.constant 0 : i32
    return %c0_i32, %c0_i32_0 : i32, i32
  }
  func.func @transform_3(%arg0: i32) -> (i32, i32) {
    %c0_i32 = arith.constant 0 : i32
    %c0_i32_0 = arith.constant 0 : i32
    %c0_i32_1 = arith.constant 0 : i32
    return %c0_i32, %c0_i32_0 : i32, i32
  }
  func.func @transform_4(%arg0: i32) -> (i32, i32) {
    %c0_i32 = arith.constant 0 : i32
    %c0_i32_0 = arith.constant 0 : i32
    %c0_i32_1 = arith.constant 0 : i32
    return %c0_i32, %c0_i32_0 : i32, i32
  }
  func.func @transform_5(%arg0: i32) -> (i32, i32) {
    %c0_i32 = arith.constant 0 : i32
    %c0_i32_0 = arith.constant 0 : i32
    %c0_i32_1 = arith.constant 0 : i32
    return %c0_i32, %c0_i32_0 : i32, i32
  }
  func.func @transform_6(%arg0: i32) -> (i32, i32) {
    %c0_i32 = arith.constant 0 : i32
    %c0_i32_0 = arith.constant 0 : i32
    %c0_i32_1 = arith.constant 0 : i32
    return %c0_i32, %c0_i32_0 : i32, i32
  }
  func.func @transform_7(%arg0: i32) -> (i32, i32, i32) {
    %c0_i32 = arith.constant 0 : i32
    %c0_i32_0 = arith.constant 0 : i32
    %c0_i32_1 = arith.constant 0 : i32
    return %arg0, %c0_i32, %c0_i32_0 : i32, i32, i32
  }
}

module attributes {stable_mosaic.version = 11 : i64} {
  func.func @_linear_kernel(%arg0: i32, %arg1: memref<8x32xf32, #tpu.memory_space<vmem>>, %arg2: memref<32x96xf32, #tpu.memory_space<vmem>>, %arg3: memref<1x96xf32, #tpu.memory_space<vmem>>, %arg4: memref<8x96xf32, #tpu.memory_space<vmem>>) attributes {dimension_semantics = [#tpu.dimension_semantics<parallel>], iteration_bounds = array<i64: 1>, scalar_prefetch = 0 : i64, scratch_operands = 0 : i64, tpu.core_type = #tpu.core_type<tc>, window_params = [{transform_indices = @transform_0, window_bounds = array<i64: 8, 32>}, {pipeline_mode = #tpu.pipeline_mode<synchronous>, transform_indices = @transform_1, window_bounds = array<i64: 32, 96>}, {pipeline_mode = #tpu.pipeline_mode<synchronous>, transform_indices = @transform_2, window_bounds = array<i64: 1, 96>}, {transform_indices = @transform_3, window_bounds = array<i64: 8, 96>}]} {
    %c0 = arith.constant 0 : index
    %c0_0 = arith.constant 0 : index
    %0 = vector.load %arg1[%c0, %c0_0] : memref<8x32xf32, #tpu.memory_space<vmem>>, vector<8x32xf32>
    %c0_1 = arith.constant 0 : index
    %c0_2 = arith.constant 0 : index
    %1 = vector.load %arg2[%c0_1, %c0_2] : memref<32x96xf32, #tpu.memory_space<vmem>>, vector<32x96xf32>
    %cst = arith.constant dense<0.000000e+00> : vector<8x96xf32>
    %2 = tpu.matmul %0, %1, %cst {dimension_numbers = #tpu.dot_dimension_numbers<[1], [0], [0], [1], [0, 0, 1, 1], [], []>} : vector<8x32xf32>, vector<32x96xf32>, vector<8x96xf32> -> vector<8x96xf32>
    %c0_3 = arith.constant 0 : index
    %c0_4 = arith.constant 0 : index
    %3 = vector.load %arg3[%c0_3, %c0_4] : memref<1x96xf32, #tpu.memory_space<vmem>>, vector<1x96xf32>
    %4 = vector.broadcast %3 : vector<1x96xf32> to vector<8x96xf32>
    %5 = arith.addf %2, %4 : vector<8x96xf32>
    %c0_5 = arith.constant 0 : index
    %c0_6 = arith.constant 0 : index
    %6 = vector.load %arg4[%c0_5, %c0_6] : memref<8x96xf32, #tpu.memory_space<vmem>>, vector<8x96xf32>
    tpu.vector_store %arg4[%c0_5, %c0_6], %5 {strides = array<i32>} : memref<8x96xf32, #tpu.memory_space<vmem>>, vector<8x96xf32>,
    return
  }
  func.func @transform_0(%arg0: i32) -> (i32, i32) {
    %c0_i32 = arith.constant 0 : i32
    %c0_i32_0 = arith.constant 0 : i32
    return %arg0, %c0_i32 : i32, i32
  }
  func.func @transform_1(%arg0: i32) -> (i32, i32) {
    %c0_i32 = arith.constant 0 : i32
    %c0_i32_0 = arith.constant 0 : i32
    %c0_i32_1 = arith.constant 0 : i32
    return %c0_i32, %c0_i32_0 : i32, i32
  }
  func.func @transform_2(%arg0: i32) -> (i32, i32) {
    %c0_i32 = arith.constant 0 : i32
    %c0_i32_0 = arith.constant 0 : i32
    %c0_i32_1 = arith.constant 0 : i32
    return %c0_i32, %c0_i32_0 : i32, i32
  }
  func.func @transform_3(%arg0: i32) -> (i32, i32) {
    %c0_i32 = arith.constant 0 : i32
    %c0_i32_0 = arith.constant 0 : i32
    return %arg0, %c0_i32 : i32, i32
  }
}

module attributes {stable_mosaic.version = 11 : i64} {
  func.func @_attention_kernel(%arg0: i32, %arg1: memref<1x4x8xf32, #tpu.memory_space<vmem>>, %arg2: memref<1x4x8xf32, #tpu.memory_space<vmem>>, %arg3: memref<1x4x8xf32, #tpu.memory_space<vmem>>, %arg4: memref<1x4x8xf32, #tpu.memory_space<vmem>>, %arg5: memref<1x4x4xf32, #tpu.memory_space<vmem>>) attributes {dimension_semantics = [#tpu.dimension_semantics<parallel>], iteration_bounds = array<i64: 8>, scalar_prefetch = 0 : i64, scratch_operands = 0 : i64, tpu.core_type = #tpu.core_type<tc>, window_params = [{transform_indices = @transform_0, window_bounds = array<i64: 1, 4, 8>}, {transform_indices = @transform_1, window_bounds = array<i64: 1, 4, 8>}, {transform_indices = @transform_2, window_bounds = array<i64: 1, 4, 8>}, {transform_indices = @transform_3, window_bounds = array<i64: 1, 4, 8>}, {transform_indices = @transform_4, window_bounds = array<i64: 1, 4, 4>}]} {
    %c0 = arith.constant 0 : index
    %c0_0 = arith.constant 0 : index
    %c0_1 = arith.constant 0 : index
    %0 = vector.load %arg1[%c0, %c0_0, %c0_1] : memref<1x4x8xf32, #tpu.memory_space<vmem>>, vector<1x4x8xf32>
    %1 = vector.shape_cast %0 : vector<1x4x8xf32> to vector<4x8xf32>
    %cst = arith.constant 0.353553385 : f32
    %2 = vector.broadcast %cst : f32 to vector<4x8xf32>
    %3 = arith.mulf %1, %2 : vector<4x8xf32>
    %c0_2 = arith.constant 0 : index
    %c0_3 = arith.constant 0 : index
    %c0_4 = arith.constant 0 : index
    %4 = vector.load %arg2[%c0_2, %c0_3, %c0_4] : memref<1x4x8xf32, #tpu.memory_space<vmem>>, vector<1x4x8xf32>
    %5 = vector.shape_cast %4 : vector<1x4x8xf32> to vector<4x8xf32>
    %c0_5 = arith.constant 0 : index
    %c0_6 = arith.constant 0 : index
    %c0_7 = arith.constant 0 : index
    %6 = vector.load %arg3[%c0_5, %c0_6, %c0_7] : memref<1x4x8xf32, #tpu.memory_space<vmem>>, vector<1x4x8xf32>
    %7 = vector.shape_cast %6 : vector<1x4x8xf32> to vector<4x8xf32>
    %8 = tpu.transpose %5, [1, 0] : vector<4x8xf32> -> vector<8x4xf32>
    %cst_8 = arith.constant dense<0.000000e+00> : vector<4x4xf32>
    %9 = tpu.matmul %3, %8, %cst_8 {dimension_numbers = #tpu.dot_dimension_numbers<[1], [0], [0], [1], [0, 0, 1, 1], [], []>} : vector<4x8xf32>, vector<8x4xf32>, vector<4x4xf32> -> vector<4x4xf32>
    %cst_9 = arith.constant dense<0xFF800000> : vector<4xf32>
    %10 = vector.multi_reduction <maximumf>, %9, %cst_9 [1] : vector<4x4xf32> to vector<4xf32>
    %11 = vector.shape_cast %10 : vector<4xf32> to vector<4x1xf32>
    %12 = vector.broadcast %11 : vector<4x1xf32> to vector<4x4xf32>
    %13 = arith.subf %9, %12 : vector<4x4xf32>
    %14 = math.exp %13 : vector<4x4xf32>
    %cst_10 = arith.constant dense<0.000000e+00> : vector<4xf32>
    %15 = vector.multi_reduction <add>, %14, %cst_10 [1] : vector<4x4xf32> to vector<4xf32>
    %16 = vector.shape_cast %15 : vector<4xf32> to vector<4x1xf32>
    %17 = tpu.reciprocal %16 {approx = true} : vector<4x1xf32> -> vector<4x1xf32>
    %18 = vector.broadcast %17 : vector<4x1xf32> to vector<4x4xf32>
    %19 = arith.mulf %14, %18 : vector<4x4xf32>
    %cst_11 = arith.constant dense<0.000000e+00> : vector<4x8xf32>
    %20 = tpu.matmul %19, %7, %cst_11 {dimension_numbers = #tpu.dot_dimension_numbers<[1], [0], [0], [1], [0, 0, 1, 1], [], []>} : vector<4x4xf32>, vector<4x8xf32>, vector<4x8xf32> -> vector<4x8xf32>
    %c0_12 = arith.constant 0 : index
    %c0_13 = arith.constant 0 : index
    %c0_14 = arith.constant 0 : index
    %21 = vector.load %arg4[%c0_12, %c0_13, %c0_14] : memref<1x4x8xf32, #tpu.memory_space<vmem>>, vector<1x4x8xf32>
    %22 = vector.shape_cast %21 : vector<1x4x8xf32> to vector<4x8xf32>
    %23 = vector.shape_cast %20 : vector<4x8xf32> to vector<1x4x8xf32>
    tpu.vector_store %arg4[%c0_12, %c0_13, %c0_14], %23 {strides = array<i32>} : memref<1x4x8xf32, #tpu.memory_space<vmem>>, vector<1x4x8xf32>,
    %c0_15 = arith.constant 0 : index
    %c0_16 = arith.constant 0 : index
    %c0_17 = arith.constant 0 : index
    %24 = vector.load %arg5[%c0_15, %c0_16, %c0_17] : memref<1x4x4xf32, #tpu.memory_space<vmem>>, vector<1x4x4xf32>
    %25 = vector.shape_cast %24 : vector<1x4x4xf32> to vector<4x4xf32>
    %26 = vector.shape_cast %19 : vector<4x4xf32> to vector<1x4x4xf32>
    tpu.vector_store %arg5[%c0_15, %c0_16, %c0_17], %26 {strides = array<i32>} : memref<1x4x4xf32, #tpu.memory_space<vmem>>, vector<1x4x4xf32>,
    return
  }
  func.func @transform_0(%arg0: i32) -> (i32, i32, i32) {
    %c0_i32 = arith.constant 0 : i32
    %c0_i32_0 = arith.constant 0 : i32
    %c0_i32_1 = arith.constant 0 : i32
    return %arg0, %c0_i32, %c0_i32_0 : i32, i32, i32
  }
  func.func @transform_1(%arg0: i32) -> (i32, i32, i32) {
    %c0_i32 = arith.constant 0 : i32
    %c0_i32_0 = arith.constant 0 : i32
    %c0_i32_1 = arith.constant 0 : i32
    return %arg0, %c0_i32, %c0_i32_0 : i32, i32, i32
  }
  func.func @transform_2(%arg0: i32) -> (i32, i32, i32) {
    %c0_i32 = arith.constant 0 : i32
    %c0_i32_0 = arith.constant 0 : i32
    %c0_i32_1 = arith.constant 0 : i32
    return %arg0, %c0_i32, %c0_i32_0 : i32, i32, i32
  }
  func.func @transform_3(%arg0: i32) -> (i32, i32, i32) {
    %c0_i32 = arith.constant 0 : i32
    %c0_i32_0 = arith.constant 0 : i32
    %c0_i32_1 = arith.constant 0 : i32
    return %arg0, %c0_i32, %c0_i32_0 : i32, i32, i32
  }
  func.func @transform_4(%arg0: i32) -> (i32, i32, i32) {
    %c0_i32 = arith.constant 0 : i32
    %c0_i32_0 = arith.constant 0 : i32
    %c0_i32_1 = arith.constant 0 : i32
    return %arg0, %c0_i32, %c0_i32_0 : i32, i32, i32
  }
}

module attributes {stable_mosaic.version = 11 : i64} {
  func.func @_proj_residual_ln_kernel(%arg0: i32, %arg1: memref<8x32xf32, #tpu.memory_space<vmem>>, %arg2: memref<8x32xf32, #tpu.memory_space<vmem>>, %arg3: memref<32x32xf32, #tpu.memory_space<vmem>>, %arg4: memref<1x32xf32, #tpu.memory_space<vmem>>, %arg5: memref<1x32xf32, #tpu.memory_space<vmem>>, %arg6: memref<1x32xf32, #tpu.memory_space<vmem>>, %arg7: memref<8x32xf32, #tpu.memory_space<vmem>>) attributes {dimension_semantics = [#tpu.dimension_semantics<parallel>], iteration_bounds = array<i64: 1>, scalar_prefetch = 0 : i64, scratch_operands = 0 : i64, tpu.core_type = #tpu.core_type<tc>, window_params = [{transform_indices = @transform_0, window_bounds = array<i64: 8, 32>}, {transform_indices = @transform_1, window_bounds = array<i64: 8, 32>}, {pipeline_mode = #tpu.pipeline_mode<synchronous>, transform_indices = @transform_2, window_bounds = array<i64: 32, 32>}, {pipeline_mode = #tpu.pipeline_mode<synchronous>, transform_indices = @transform_3, window_bounds = array<i64: 1, 32>}, {pipeline_mode = #tpu.pipeline_mode<synchronous>, transform_indices = @transform_4, window_bounds = array<i64: 1, 32>}, {pipeline_mode = #tpu.pipeline_mode<synchronous>, transform_indices = @transform_5, window_bounds = array<i64: 1, 32>}, {transform_indices = @transform_6, window_bounds = array<i64: 8, 32>}]} {
    %c0 = arith.constant 0 : index
    %c0_0 = arith.constant 0 : index
    %0 = vector.load %arg2[%c0, %c0_0] : memref<8x32xf32, #tpu.memory_space<vmem>>, vector<8x32xf32>
    %c0_1 = arith.constant 0 : index
    %c0_2 = arith.constant 0 : index
    %1 = vector.load %arg3[%c0_1, %c0_2] : memref<32x32xf32, #tpu.memory_space<vmem>>, vector<32x32xf32>
    %cst = arith.constant dense<0.000000e+00> : vector<8x32xf32>
    %2 = tpu.matmul %0, %1, %cst {dimension_numbers = #tpu.dot_dimension_numbers<[1], [0], [0], [1], [0, 0, 1, 1], [], []>} : vector<8x32xf32>, vector<32x32xf32>, vector<8x32xf32> -> vector<8x32xf32>
    %c0_3 = arith.constant 0 : index
    %c0_4 = arith.constant 0 : index
    %3 = vector.load %arg4[%c0_3, %c0_4] : memref<1x32xf32, #tpu.memory_space<vmem>>, vector<1x32xf32>
    %4 = vector.broadcast %3 : vector<1x32xf32> to vector<8x32xf32>
    %5 = arith.addf %2, %4 : vector<8x32xf32>
    %c0_5 = arith.constant 0 : index
    %c0_6 = arith.constant 0 : index
    %6 = vector.load %arg1[%c0_5, %c0_6] : memref<8x32xf32, #tpu.memory_space<vmem>>, vector<8x32xf32>
    %7 = arith.addf %6, %5 : vector<8x32xf32>
    %cst_7 = arith.constant dense<0.000000e+00> : vector<8xf32>
    %8 = vector.multi_reduction <add>, %7, %cst_7 [1] : vector<8x32xf32> to vector<8xf32>
    %9 = vector.shape_cast %8 : vector<8xf32> to vector<8x1xf32>
    %cst_8 = arith.constant 3.200000e+01 : f32
    %10 = vector.broadcast %cst_8 : f32 to vector<8x1xf32>
    %11 = arith.divf %9, %10 : vector<8x1xf32>
    %12 = vector.broadcast %11 : vector<8x1xf32> to vector<8x32xf32>
    %13 = arith.subf %7, %12 : vector<8x32xf32>
    %14 = arith.mulf %13, %13 : vector<8x32xf32>
    %cst_9 = arith.constant dense<0.000000e+00> : vector<8xf32>
    %15 = vector.multi_reduction <add>, %14, %cst_9 [1] : vector<8x32xf32> to vector<8xf32>
    %16 = vector.shape_cast %15 : vector<8xf32> to vector<8x1xf32>
    %cst_10 = arith.constant 3.200000e+01 : f32
    %17 = vector.broadcast %cst_10 : f32 to vector<8x1xf32>
    %18 = arith.divf %16, %17 : vector<8x1xf32>
    %19 = vector.broadcast %11 : vector<8x1xf32> to vector<8x32xf32>
    %20 = arith.subf %7, %19 : vector<8x32xf32>
    %cst_11 = arith.constant 9.99999974E-6 : f32
    %21 = vector.broadcast %cst_11 : f32 to vector<8x1xf32>
    %22 = arith.addf %18, %21 : vector<8x1xf32>
    %23 = math.rsqrt %22 : vector<8x1xf32>
    %24 = vector.broadcast %23 : vector<8x1xf32> to vector<8x32xf32>
    %25 = arith.mulf %20, %24 : vector<8x32xf32>
    %c0_12 = arith.constant 0 : index
    %c0_13 = arith.constant 0 : index
    %26 = vector.load %arg5[%c0_12, %c0_13] : memref<1x32xf32, #tpu.memory_space<vmem>>, vector<1x32xf32>
    %27 = vector.broadcast %26 : vector<1x32xf32> to vector<8x32xf32>
    %28 = arith.mulf %25, %27 : vector<8x32xf32>
    %c0_14 = arith.constant 0 : index
    %c0_15 = arith.constant 0 : index
    %29 = vector.load %arg6[%c0_14, %c0_15] : memref<1x32xf32, #tpu.memory_space<vmem>>, vector<1x32xf32>
    %30 = vector.broadcast %29 : vector<1x32xf32> to vector<8x32xf32>
    %31 = arith.addf %28, %30 : vector<8x32xf32>
    %c0_16 = arith.constant 0 : index
    %c0_17 = arith.constant 0 : index
    %32 = vector.load %arg7[%c0_16, %c0_17] : memref<8x32xf32, #tpu.memory_space<vmem>>, vector<8x32xf32>
    tpu.vector_store %arg7[%c0_16, %c0_17], %31 {strides = array<i32>} : memref<8x32xf32, #tpu.memory_space<vmem>>, vector<8x32xf32>,
    return
  }
  func.func @transform_0(%arg0: i32) -> (i32, i32) {
    %c0_i32 = arith.constant 0 : i32
    %c0_i32_0 = arith.constant 0 : i32
    return %arg0, %c0_i32 : i32, i32
  }
  func.func @transform_1(%arg0: i32) -> (i32, i32) {
    %c0_i32 = arith.constant 0 : i32
    %c0_i32_0 = arith.constant 0 : i32
    return %arg0, %c0_i32 : i32, i32
  }
  func.func @transform_2(%arg0: i32) -> (i32, i32) {
    %c0_i32 = arith.constant 0 : i32
    %c0_i32_0 = arith.constant 0 : i32
    %c0_i32_1 = arith.constant 0 : i32
    return %c0_i32, %c0_i32_0 : i32, i32
  }
  func.func @transform_3(%arg0: i32) -> (i32, i32) {
    %c0_i32 = arith.constant 0 : i32
    %c0_i32_0 = arith.constant 0 : i32
    %c0_i32_1 = arith.constant 0 : i32
    return %c0_i32, %c0_i32_0 : i32, i32
  }
  func.func @transform_4(%arg0: i32) -> (i32, i32) {
    %c0_i32 = arith.constant 0 : i32
    %c0_i32_0 = arith.constant 0 : i32
    %c0_i32_1 = arith.constant 0 : i32
    return %c0_i32, %c0_i32_0 : i32, i32
  }
  func.func @transform_5(%arg0: i32) -> (i32, i32) {
    %c0_i32 = arith.constant 0 : i32
    %c0_i32_0 = arith.constant 0 : i32
    %c0_i32_1 = arith.constant 0 : i32
    return %c0_i32, %c0_i32_0 : i32, i32
  }
  func.func @transform_6(%arg0: i32) -> (i32, i32) {
    %c0_i32 = arith.constant 0 : i32
    %c0_i32_0 = arith.constant 0 : i32
    return %arg0, %c0_i32 : i32, i32
  }
}

module attributes {stable_mosaic.version = 11 : i64} {
  func.func @_ffn_residual_ln_kernel(%arg0: i32, %arg1: memref<8x32xf32, #tpu.memory_space<vmem>>, %arg2: memref<32x64xf32, #tpu.memory_space<vmem>>, %arg3: memref<1x64xf32, #tpu.memory_space<vmem>>, %arg4: memref<64x32xf32, #tpu.memory_space<vmem>>, %arg5: memref<1x32xf32, #tpu.memory_space<vmem>>, %arg6: memref<1x32xf32, #tpu.memory_space<vmem>>, %arg7: memref<1x32xf32, #tpu.memory_space<vmem>>, %arg8: memref<8x32xf32, #tpu.memory_space<vmem>>) attributes {dimension_semantics = [#tpu.dimension_semantics<parallel>], iteration_bounds = array<i64: 1>, scalar_prefetch = 0 : i64, scratch_operands = 0 : i64, tpu.core_type = #tpu.core_type<tc>, window_params = [{transform_indices = @transform_0, window_bounds = array<i64: 8, 32>}, {pipeline_mode = #tpu.pipeline_mode<synchronous>, transform_indices = @transform_1, window_bounds = array<i64: 32, 64>}, {pipeline_mode = #tpu.pipeline_mode<synchronous>, transform_indices = @transform_2, window_bounds = array<i64: 1, 64>}, {pipeline_mode = #tpu.pipeline_mode<synchronous>, transform_indices = @transform_3, window_bounds = array<i64: 64, 32>}, {pipeline_mode = #tpu.pipeline_mode<synchronous>, transform_indices = @transform_4, window_bounds = array<i64: 1, 32>}, {pipeline_mode = #tpu.pipeline_mode<synchronous>, transform_indices = @transform_5, window_bounds = array<i64: 1, 32>}, {pipeline_mode = #tpu.pipeline_mode<synchronous>, transform_indices = @transform_6, window_bounds = array<i64: 1, 32>}, {transform_indices = @transform_7, window_bounds = array<i64: 8, 32>}]} {
    %c0 = arith.constant 0 : index
    %c0_0 = arith.constant 0 : index
    %0 = vector.load %arg1[%c0, %c0_0] : memref<8x32xf32, #tpu.memory_space<vmem>>, vector<8x32xf32>
    %c0_1 = arith.constant 0 : index
    %c0_2 = arith.constant 0 : index
    %1 = vector.load %arg2[%c0_1, %c0_2] : memref<32x64xf32, #tpu.memory_space<vmem>>, vector<32x64xf32>
    %cst = arith.constant dense<0.000000e+00> : vector<8x64xf32>
    %2 = tpu.matmul %0, %1, %cst {dimension_numbers = #tpu.dot_dimension_numbers<[1], [0], [0], [1], [0, 0, 1, 1], [], []>} : vector<8x32xf32>, vector<32x64xf32>, vector<8x64xf32> -> vector<8x64xf32>
    %c0_3 = arith.constant 0 : index
    %c0_4 = arith.constant 0 : index
    %3 = vector.load %arg3[%c0_3, %c0_4] : memref<1x64xf32, #tpu.memory_space<vmem>>, vector<1x64xf32>
    %4 = vector.broadcast %3 : vector<1x64xf32> to vector<8x64xf32>
    %5 = arith.addf %2, %4 : vector<8x64xf32>
    %cst_5 = arith.constant 0.000000e+00 : f32
    %6 = vector.broadcast %cst_5 : f32 to vector<8x64xf32>
    %7 = arith.maximumf %5, %6 : vector<8x64xf32>
    %c0_6 = arith.constant 0 : index
    %c0_7 = arith.constant 0 : index
    %8 = vector.load %arg4[%c0_6, %c0_7] : memref<64x32xf32, #tpu.memory_space<vmem>>, vector<64x32xf32>
    %cst_8 = arith.constant dense<0.000000e+00> : vector<8x32xf32>
    %9 = tpu.matmul %7, %8, %cst_8 {dimension_numbers = #tpu.dot_dimension_numbers<[1], [0], [0], [1], [0, 0, 1, 1], [], []>} : vector<8x64xf32>, vector<64x32xf32>, vector<8x32xf32> -> vector<8x32xf32>
    %c0_9 = arith.constant 0 : index
    %c0_10 = arith.constant 0 : index
    %10 = vector.load %arg5[%c0_9, %c0_10] : memref<1x32xf32, #tpu.memory_space<vmem>>, vector<1x32xf32>
    %11 = vector.broadcast %10 : vector<1x32xf32> to vector<8x32xf32>
    %12 = arith.addf %9, %11 : vector<8x32xf32>
    %13 = arith.addf %0, %12 : vector<8x32xf32>
    %cst_11 = arith.constant dense<0.000000e+00> : vector<8xf32>
    %14 = vector.multi_reduction <add>, %13, %cst_11 [1] : vector<8x32xf32> to vector<8xf32>
    %15 = vector.shape_cast %14 : vector<8xf32> to vector<8x1xf32>
    %cst_12 = arith.constant 3.200000e+01 : f32
    %16 = vector.broadcast %cst_12 : f32 to vector<8x1xf32>
    %17 = arith.divf %15, %16 : vector<8x1xf32>
    %18 = vector.broadcast %17 : vector<8x1xf32> to vector<8x32xf32>
    %19 = arith.subf %13, %18 : vector<8x32xf32>
    %20 = arith.mulf %19, %19 : vector<8x32xf32>
    %cst_13 = arith.constant dense<0.000000e+00> : vector<8xf32>
    %21 = vector.multi_reduction <add>, %20, %cst_13 [1] : vector<8x32xf32> to vector<8xf32>
    %22 = vector.shape_cast %21 : vector<8xf32> to vector<8x1xf32>
    %cst_14 = arith.constant 3.200000e+01 : f32
    %23 = vector.broadcast %cst_14 : f32 to vector<8x1xf32>
    %24 = arith.divf %22, %23 : vector<8x1xf32>
    %25 = vector.broadcast %17 : vector<8x1xf32> to vector<8x32xf32>
    %26 = arith.subf %13, %25 : vector<8x32xf32>
    %cst_15 = arith.constant 9.99999974E-6 : f32
    %27 = vector.broadcast %cst_15 : f32 to vector<8x1xf32>
    %28 = arith.addf %24, %27 : vector<8x1xf32>
    %29 = math.rsqrt %28 : vector<8x1xf32>
    %30 = vector.broadcast %29 : vector<8x1xf32> to vector<8x32xf32>
    %31 = arith.mulf %26, %30 : vector<8x32xf32>
    %c0_16 = arith.constant 0 : index
    %c0_17 = arith.constant 0 : index
    %32 = vector.load %arg6[%c0_16, %c0_17] : memref<1x32xf32, #tpu.memory_space<vmem>>, vector<1x32xf32>
    %33 = vector.broadcast %32 : vector<1x32xf32> to vector<8x32xf32>
    %34 = arith.mulf %31, %33 : vector<8x32xf32>
    %c0_18 = arith.constant 0 : index
    %c0_19 = arith.constant 0 : index
    %35 = vector.load %arg7[%c0_18, %c0_19] : memref<1x32xf32, #tpu.memory_space<vmem>>, vector<1x32xf32>
    %36 = vector.broadcast %35 : vector<1x32xf32> to vector<8x32xf32>
    %37 = arith.addf %34, %36 : vector<8x32xf32>
    %c0_20 = arith.constant 0 : index
    %c0_21 = arith.constant 0 : index
    %38 = vector.load %arg8[%c0_20, %c0_21] : memref<8x32xf32, #tpu.memory_space<vmem>>, vector<8x32xf32>
    tpu.vector_store %arg8[%c0_20, %c0_21], %37 {strides = array<i32>} : memref<8x32xf32, #tpu.memory_space<vmem>>, vector<8x32xf32>,
    return
  }
  func.func @transform_0(%arg0: i32) -> (i32, i32) {
    %c0_i32 = arith.constant 0 : i32
    %c0_i32_0 = arith.constant 0 : i32
    return %arg0, %c0_i32 : i32, i32
  }
  func.func @transform_1(%arg0: i32) -> (i32, i32) {
    %c0_i32 = arith.constant 0 : i32
    %c0_i32_0 = arith.constant 0 : i32
    %c0_i32_1 = arith.constant 0 : i32
    return %c0_i32, %c0_i32_0 : i32, i32
  }
  func.func @transform_2(%arg0: i32) -> (i32, i32) {
    %c0_i32 = arith.constant 0 : i32
    %c0_i32_0 = arith.constant 0 : i32
    %c0_i32_1 = arith.constant 0 : i32
    return %c0_i32, %c0_i32_0 : i32, i32
  }
  func.func @transform_3(%arg0: i32) -> (i32, i32) {
    %c0_i32 = arith.constant 0 : i32
    %c0_i32_0 = arith.constant 0 : i32
    %c0_i32_1 = arith.constant 0 : i32
    return %c0_i32, %c0_i32_0 : i32, i32
  }
  func.func @transform_4(%arg0: i32) -> (i32, i32) {
    %c0_i32 = arith.constant 0 : i32
    %c0_i32_0 = arith.constant 0 : i32
    %c0_i32_1 = arith.constant 0 : i32
    return %c0_i32, %c0_i32_0 : i32, i32
  }
  func.func @transform_5(%arg0: i32) -> (i32, i32) {
    %c0_i32 = arith.constant 0 : i32
    %c0_i32_0 = arith.constant 0 : i32
    %c0_i32_1 = arith.constant 0 : i32
    return %c0_i32, %c0_i32_0 : i32, i32
  }
  func.func @transform_6(%arg0: i32) -> (i32, i32) {
    %c0_i32 = arith.constant 0 : i32
    %c0_i32_0 = arith.constant 0 : i32
    %c0_i32_1 = arith.constant 0 : i32
    return %c0_i32, %c0_i32_0 : i32, i32
  }
  func.func @transform_7(%arg0: i32) -> (i32, i32) {
    %c0_i32 = arith.constant 0 : i32
    %c0_i32_0 = arith.constant 0 : i32
    return %arg0, %c0_i32 : i32, i32
  }
}

module attributes {stable_mosaic.version = 11 : i64} {
  func.func @_ln_kernel(%arg0: i32, %arg1: memref<8x32xf32, #tpu.memory_space<vmem>>, %arg2: memref<1x32xf32, #tpu.memory_space<vmem>>, %arg3: memref<1x32xf32, #tpu.memory_space<vmem>>, %arg4: memref<8x32xf32, #tpu.memory_space<vmem>>) attributes {dimension_semantics = [#tpu.dimension_semantics<parallel>], iteration_bounds = array<i64: 1>, scalar_prefetch = 0 : i64, scratch_operands = 0 : i64, tpu.core_type = #tpu.core_type<tc>, window_params = [{transform_indices = @transform_0, window_bounds = array<i64: 8, 32>}, {pipeline_mode = #tpu.pipeline_mode<synchronous>, transform_indices = @transform_1, window_bounds = array<i64: 1, 32>}, {pipeline_mode = #tpu.pipeline_mode<synchronous>, transform_indices = @transform_2, window_bounds = array<i64: 1, 32>}, {transform_indices = @transform_3, window_bounds = array<i64: 8, 32>}]} {
    %c0 = arith.constant 0 : index
    %c0_0 = arith.constant 0 : index
    %0 = vector.load %arg1[%c0, %c0_0] : memref<8x32xf32, #tpu.memory_space<vmem>>, vector<8x32xf32>
    %cst = arith.constant dense<0.000000e+00> : vector<8xf32>
    %1 = vector.multi_reduction <add>, %0, %cst [1] : vector<8x32xf32> to vector<8xf32>
    %2 = vector.shape_cast %1 : vector<8xf32> to vector<8x1xf32>
    %cst_1 = arith.constant 3.200000e+01 : f32
    %3 = vector.broadcast %cst_1 : f32 to vector<8x1xf32>
    %4 = arith.divf %2, %3 : vector<8x1xf32>
    %5 = vector.broadcast %4 : vector<8x1xf32> to vector<8x32xf32>
    %6 = arith.subf %0, %5 : vector<8x32xf32>
    %7 = arith.mulf %6, %6 : vector<8x32xf32>
    %cst_2 = arith.constant dense<0.000000e+00> : vector<8xf32>
    %8 = vector.multi_reduction <add>, %7, %cst_2 [1] : vector<8x32xf32> to vector<8xf32>
    %9 = vector.shape_cast %8 : vector<8xf32> to vector<8x1xf32>
    %cst_3 = arith.constant 3.200000e+01 : f32
    %10 = vector.broadcast %cst_3 : f32 to vector<8x1xf32>
    %11 = arith.divf %9, %10 : vector<8x1xf32>
    %12 = vector.broadcast %4 : vector<8x1xf32> to vector<8x32xf32>
    %13 = arith.subf %0, %12 : vector<8x32xf32>
    %cst_4 = arith.constant 9.99999974E-6 : f32
    %14 = vector.broadcast %cst_4 : f32 to vector<8x1xf32>
    %15 = arith.addf %11, %14 : vector<8x1xf32>
    %16 = math.rsqrt %15 : vector<8x1xf32>
    %17 = vector.broadcast %16 : vector<8x1xf32> to vector<8x32xf32>
    %18 = arith.mulf %13, %17 : vector<8x32xf32>
    %c0_5 = arith.constant 0 : index
    %c0_6 = arith.constant 0 : index
    %19 = vector.load %arg2[%c0_5, %c0_6] : memref<1x32xf32, #tpu.memory_space<vmem>>, vector<1x32xf32>
    %20 = vector.broadcast %19 : vector<1x32xf32> to vector<8x32xf32>
    %21 = arith.mulf %18, %20 : vector<8x32xf32>
    %c0_7 = arith.constant 0 : index
    %c0_8 = arith.constant 0 : index
    %22 = vector.load %arg3[%c0_7, %c0_8] : memref<1x32xf32, #tpu.memory_space<vmem>>, vector<1x32xf32>
    %23 = vector.broadcast %22 : vector<1x32xf32> to vector<8x32xf32>
    %24 = arith.addf %21, %23 : vector<8x32xf32>
    %c0_9 = arith.constant 0 : index
    %c0_10 = arith.constant 0 : index
    %25 = vector.load %arg4[%c0_9, %c0_10] : memref<8x32xf32, #tpu.memory_space<vmem>>, vector<8x32xf32>
    tpu.vector_store %arg4[%c0_9, %c0_10], %24 {strides = array<i32>} : memref<8x32xf32, #tpu.memory_space<vmem>>, vector<8x32xf32>,
    return
  }
  func.func @transform_0(%arg0: i32) -> (i32, i32) {
    %c0_i32 = arith.constant 0 : i32
    %c0_i32_0 = arith.constant 0 : i32
    return %arg0, %c0_i32 : i32, i32
  }
  func.func @transform_1(%arg0: i32) -> (i32, i32) {
    %c0_i32 = arith.constant 0 : i32
    %c0_i32_0 = arith.constant 0 : i32
    %c0_i32_1 = arith.constant 0 : i32
    return %c0_i32, %c0_i32_0 : i32, i32
  }
  func.func @transform_2(%arg0: i32) -> (i32, i32) {
    %c0_i32 = arith.constant 0 : i32
    %c0_i32_0 = arith.constant 0 : i32
    %c0_i32_1 = arith.constant 0 : i32
    return %c0_i32, %c0_i32_0 : i32, i32
  }
  func.func @transform_3(%arg0: i32) -> (i32, i32) {
    %c0_i32 = arith.constant 0 : i32
    %c0_i32_0 = arith.constant 0 : i32
    return %arg0, %c0_i32 : i32, i32
  }
}

</mosaic_0001>

<bundles_post_ra>
// kernel: encoder_forward.10
= control target key start
LH: loop header
LB: loop body
LE: loop exit
PB: predicated region body
PF: predicated region fallthrough
CT: control target
= control target key end

     0   :  { %vm27_vm0 = vcmask 261120   ;;  %vm109_vm1 = vcmask 785408   ;;  %s185_s1 = inlined_call_operand.vmem [shape: f32[32,96], index: 1, kind: input, shape index: {}]   ;;  %s186_s0 = inlined_call_operand.vmem [shape: f32[16,32], index: 0, kind: input, shape index: {}]   ;;  %s187_s2 = inlined_call_operand.vmem [shape: f32[1,96], index: 2, kind: input, shape index: {}]   ;;  %s188_s3 = inlined_call_operand.vmem [shape: f32[16,96], index: 3, kind: output, shape index: {}]  }
   0x1   :  { %v19_v0 = vld [vmem:[%s185_s1 + $0x18] sm:$0xff]  ;;  %v18_v1 = vld [vmem:[%s185_s1 + $0x10] sm:$0xff]  ;;  %v14_v2 = vld [vmem:[%s186_s0] sm:$0xff] }
   0x2   :  { %125 = vmatprep.subr.mxu0 %v19_v0  ;;  %v17_v3 = vld [vmem:[%s185_s1 + $0x8] sm:$0xff]  ;;  %133 = vmatprep.mubr.msk.f32.mxu0 %vm27_vm0, %v14_v2  ;;  %v16_v4 = vld [vmem:[%s185_s1] sm:$0xff] }
   0x3   :  { %126 = vmatpush3.msra.mxu0 %v19_v0  ;;  %v15_v5 = vld [vmem:[%s186_s0 + $0x8] sm:$0xff]  ;;  %v116_v6 = vld [vmem:[%s187_s2] ss:$0 sm:$0xff] }
   0x4   :  { %127 = vmatprep.subr.mxu0 %v18_v1 }
   0x5   :  { %128 = vmatpush3.msra.mxu0 %v18_v1 }
   0x6   :  { %129 = vmatprep.subr.mxu0 %v17_v3 }
   0x7   :  { %130 = vmatpush3.msra.mxu0 %v17_v3 }
   0x8   :  { %131 = vmatprep.subr.mxu0 %v16_v4 }
   0x9   :  { %132 = vmatpush3.msra.mxu0 %v16_v4 }
   0xa   :  { %134 = vmatmul.mubr.msk.f32.vlgmr.msra.gmra.mxu0 %vm27_vm0, %v15_v5 }
  0xca   :  { %v135_v7 = vpop.f32.mrf.mxu0 }
  0xcb   :  { %v106_v8 = vadd.f32 %v135_v7, %v116_v6 }
  0xcc   :  { %v100_v9 = vpop.f32.mrf.mxu0 }
  0xcd   :  { %111 = vst.msk [vmem:[%s188_s3 + $0x8] sm:$0xff] %vm109_vm1, %v106_v8  ;;  %v101_v10 = vadd.f32 %v116_v6, %v100_v9 }
  0xcf   :  { %110 = vst.msk [vmem:[%s188_s3] sm:$0xff] %vm109_vm1, %v101_v10 }

// kernel: encoder_forward.11
= control target key start
LH: loop header
LB: loop body
LE: loop exit
PB: predicated region body
PF: predicated region fallthrough
CT: control target
= control target key end

     0   :  { %10 = vsyncpa [#allocation3], 0  ;;  %s807_s0 = inlined_call_operand.vmem [shape: f32[8,8,8], index: 0, kind: input, shape index: {}]   ;;  %s808_s1 = inlined_call_operand.vmem [shape: f32[8,8,8], index: 1, kind: input, shape index: {}]   ;;  %s809_s2 = inlined_call_operand.vmem [shape: f32[8,8,8], index: 2, kind: input, shape index: {}]   ;;  %s810_s3 = inlined_call_operand.vmem [shape: f32[8,8,8], index: 3, kind: output, shape index: {0}]   ;;  %s811_s4 = inlined_call_operand.hbm [shape: f32[8,8,8], index: 4, kind: output, shape index: {1}]  }
   0x1   :  { %12 = vsyncpa [#allocation3 + $0x1], 0  ;;  %s698_s15 = smov 0   ;;  %s700_s16 = smov 0  }
   0x2   :  { %s702_s17 = smov 0   ;;  %s704_s18 = smov 0  }
   0x3 LB: > { %s719_s19 = sadd.s32 4294967295, %s668_s18   ;;  %s533_s20 = sadd.s32 4294967294, %s668_s18   ;;  %s668_s18 = sphi %s704_s18, %s817_s18   ;;  %s664_s17 = sphi %s702_s17, %s816_s17   ;;  %s660_s16 = sphi %s700_s16, %s815_s16   ;;  %s656_s15 = sphi %s698_s15, %s814_s15  }
   0x4   : > { %s723_s21 = sadd.s32 1, %s668_s18   ;;  %s129_s22 = sadd.s32 1, %s664_s17 }
   0x5   : > { %s126_s23 = ssub.s32 %s668_s18, %s723_s21  ;;  %p139_p0 = scmp.ne.s32.totalorder %s664_s17, %s660_s16 }
   0x6   : > { %p127_p1 = scmp.eq.s32.totalorder %s126_s23, 0  ;;  %p140_p2 = scmp.eq.s32.totalorder %s719_s19, 7 }
   0x7   : > { %p145_p3 = scmp.ne.s32.totalorder %s660_s16, %s656_s15  ;;  %p146_p4 = scmp.eq.s32.totalorder %s533_s20, 7 }
   0x8   : > { %s734_s24 = scalar_select %p127_p1, %s664_s17, %s129_s22  }
   0x9   : > { %p736_p5 = por %p140_p2, %p139_p0  ;;  %p740_p6 = por %p146_p4, %p145_p3 }
   0xa   : > { %p536_p7 = scmp.ge.s32.totalorder %s668_s18, 1  ;;  %p185_p8 = scmp.lt.s32.totalorder %s668_s18, 9 }
   0xc   : > { %p186_p9 = pnand %p536_p7, %p185_p8 }
   0xd   : > { %p222_p10 = scmp.lt.s32.totalorder (!%p186_p9), %s719_s19, 7  ;;  %s219_s12 = sand.u32 (!%p186_p9), 1, %s660_s16  }
   0xe   : > { %189 = sbr.rel (%p186_p9) target bundleno = 727 (0x2d7), region = 32  ;;  %s537_s13 = sshll.u32 (!%p186_p9), %s219_s12, 3 }
   0xf   : > { %s221_s14 = scalar_lea.vmem (!%p186_p9), [#allocation2], %s537_s13  ;;  %s546_s20 = sshll.u32 (!%p186_p9), %s719_s19, 7 }
  0x10   : > { %s426_s22 = sshll.u32 (!%p186_p9), %s221_s14, 4  ;;  %s424_s29 = scalar_lea.hbm (!%p186_p9), %s811_s4, %s546_s20  ;;  %s427_s22 = int_to_ptr.vmem [resolvable:$true] %s426_s22 }
  0x11   : > { %s410_s30 = scalar_lea.sflag (!%p186_p9), [#allocation3], %s219_s12  ;;  %s672_s6 = smov (!%p186_p9), [#allocation2]  }
  0x12   : > { %s612_s7 = sshll.u32 (!%p186_p9), %s672_s6, 4  ;;  %s613_s7 = int_to_ptr.vmem [resolvable:$false] %s612_s7 }
  0x13   : > { %v670_v0 = vmov 0.0   ;;  %vm671_vm0 = vmmov 0   ;;  %s223_s27 = scalar_select %p222_p10, %s719_s19, 7  ;;  %vm242_vm1 = vcmask 64512  }
  0x14   : > { %553 = vmatprep.subr.mxu0 %v670_v0  ;;  %555 = vmatprep.mubr.msk.f32.mxu0 %vm671_vm0, %v670_v0  ;;  %p615_p0 = scmp.lt.s32.totalorder %s427_s22, %s613_s7 }
  0x15   : > { %558 = vmatprep.subr.mxu1 %v670_v0  ;;  %560 = vmatprep.mubr.msk.f32.mxu1 %vm671_vm0, %v670_v0  ;;  %s748_s28 = sshll.u32 %s223_s27, 3 }
  0x16   : > { %s229_s5 = scalar_lea.vmem %s808_s1, %s748_s28  ;;  %s225_s8 = scalar_lea.vmem %s807_s0, %s748_s28 }
  0x17   : > { %v240_v1 = vld [vmem:[%s229_s5] sm:$0xff]  ;;  %s233_s11 = scalar_lea.vmem %s809_s2, %s748_s28  ;;  %s608_s5 = scalar_lea.vmem %s427_s22, 128 }
  0x18   : > { %v238_v2 = vld [vmem:[%s225_s8] sm:$0xff]  ;;  %554 = vmatpush3.xpose.msk.msra.mxu0 %vm242_vm1, %v240_v1  ;;  %p609_p11 = scmp.ne.s32.totalorder %s427_s22, %s608_s5  ;;  %s614_s8 = scalar_lea.vmem %s613_s7, 256 }
  0x19   : > { %v239_v3 = vmul.f32 0.35355338, %v238_v2  ;;  %v241_v12 = vld [vmem:[%s233_s11] sm:$0xff]  ;;  %p616_p1 = scmp.lt.s32.totalorder %s614_s8, %s608_s5 }
  0x1a   : > { %559 = vmatpush3.msra.mxu1 %v241_v12  ;;  %p610_p12 = pnand %p609_p11, %p736_p5 }
  0x1b   : > { %556 = vmatmul.mubr.msk.f32.vlgmr.msra.gmra.mxu0 %vm242_vm1, %v239_v3  ;;  %p617_p2 = por %p616_p1, %p615_p0 }
  0x1c   : > { %p611_p13 = pneg %p610_p12 }
  0x1e   : > { %p618_p3 = pnand %p617_p2, %p611_p13 }
  0xdb   : > { %v315_v4 = vpop.f32.mrf.mxu0 }
  0xdc   : > { %v319_v5 = vsel %vm242_vm1, %v315_v4, -inf }
  0xdd   : > { %320 = vmax.xlane.f32.xlu0 %v319_v5  ;;  %v557_v6 = vpop.f32.mrf.mxu0 }
 0x166   : > { %v321_v7 = vpop.xlane.xlu0 %320 }
 0x167   : > { %v322_v8 = vsub.f32 %v315_v4, %v321_v7 }
 0x169   : > { %v323_v9 = vmul.f32 1.442695, %v322_v8 }
 0x16b   : > { %604 = vpow2.f32 %v323_v9 }
 0x178   : > { %v605_v10 = vpop.eup %604 }
 0x179   : > { %v325_v11 = vsel %vm242_vm1, %v605_v10, 0.0 }
 0x17a   : > { %326 = vadd.xlane.f32.xlu0 %v325_v11 }
 0x203   : > { %v327_v13 = vpop.xlane.xlu0 %326 }
 0x204   : > { %606 = vrcp.f32 %v327_v13 }
 0x211   : > { %v607_v14 = vpop.eup %606 }
 0x212   : > { %v329_v15 = vmul.f32 %v607_v14, %v605_v10 }
 0x214   : > { %561 = vmatmul.mubr.msk.f32.vlgmr.msra.gmra.mxu1 %vm242_vm1, %v329_v15  ;;  %404 = vst.msk [vmem:[%s221_s14] sm:$0xff] %vm242_vm1, %v329_v15 }
 0x215   : > { %621 = shalt.err (!%p618_p3)
}
 0x216   : > { %s622_s19 = scalar_lea.hbm %s424_s29, 128  ;;  %s626_s11 = scalar_lea.hbm %s811_s4, 1024 }
 0x217   : > { %p623_p4 = scmp.ne.s32.totalorder %s424_s29, %s622_s19  ;;  %p627_p9 = scmp.lt.s32.totalorder %s424_s29, %s811_s4 }
 0x218   : > { %p628_p10 = scmp.lt.s32.totalorder %s626_s11, %s622_s19 }
 0x219   : > { %p624_p7 = pnand %p623_p4, %p736_p5 }
 0x21a   : > { %p629_p11 = por %p628_p10, %p627_p9 }
 0x21b   : > { %p625_p8 = pneg %p624_p7 }
 0x21d   : > { %p630_p12 = pnand %p629_p11, %p625_p8 }
 0x21f   : > { %633 = shalt.err (!%p630_p12)
}
 0x220   : > { %563 = dma.vmem_to_hbm [thread:$0]  (%p736_p5), %s427_s22, 128, %s424_s29, %s410_s30  }
 0x221   : > { %s237_s23 = scalar_lea.vmem %s810_s3, %s748_s28 }
 0x2d4   : > { %v399_v16 = vpop.f32.mrf.mxu1 }
 0x2d5   : > { %403 = vst.msk [vmem:[%s237_s23] sm:$0xff] %vm242_vm1, %v399_v16 }
 0x2d6   : > { %v562_v17 = vpop.f32.mrf.mxu1 }
 0x2d7 PF: > { %p569_p13 = scmp.ge.s32.totalorder %s668_s18, 2  ;;  %s445_s27 = sand.u32 1, %s656_s15  }
 0x2d8   : > { %s446_s25 = scalar_lea.sflag [#allocation3], %s445_s27 }
 0x2d9   : > { %p566_p0 = pnand %p569_p13, %p740_p6 }
 0x2db   : > { %p567_p1 = pneg %p566_p0 }
 0x2dd   : > { %651 = dma.done.wait (%p567_p1), %s446_s25, 128  }
 0x2de   : > { %653 = vsyncadd (%p567_p1), %s446_s25, 4294967168  ;;  %p15_p5 = scmp.ge.s32.totalorder %s723_s21, 10   ;;  %s814_s15 = smov %s660_s16 }
 0x2df   : > { %s815_s16 = smov %s664_s17  ;;  %s816_s17 = smov %s734_s24 }
 0x2e0   : > { %s817_s18 = smov %s723_s21  ;;  %17 = sbr.rel (!%p15_p5) target bundleno = 3 (0x3), region = 85 }
 0x2e5   :  { %451 = vsyncpa [#allocation3], 1 }
 0x2e6   :  { %453 = vsyncpa [#allocation3 + $0x1], 1 }

// kernel: encoder_forward.12
= control target key start
LH: loop header
LB: loop body
LE: loop exit
PB: predicated region body
PF: predicated region fallthrough
CT: control target
= control target key end

     0   :  { %vm36_vm0 = vcmask 261120   ;;  %s281_s2 = inlined_call_operand.vmem [shape: f32[32,32], index: 2, kind: input, shape index: {}]   ;;  %s282_s1 = inlined_call_operand.vmem [shape: f32[16,32], index: 1, kind: input, shape index: {}]   ;;  %s283_s3 = inlined_call_operand.vmem [shape: f32[1,32], index: 3, kind: input, shape index: {}]   ;;  %s284_s0 = inlined_call_operand.vmem [shape: f32[16,32], index: 0, kind: input, shape index: {}]   ;;  %s285_s4 = inlined_call_operand.vmem [shape: f32[1,32], index: 4, kind: input, shape index: {}]   ;;  %s286_s5 = inlined_call_operand.vmem [shape: f32[1,32], index: 5, kind: input, shape index: {}]   ;;  %s287_s6 = inlined_call_operand.vmem [shape: f32[16,32], index: 6, kind: output, shape index: {}]  }
   0x1   :  { %v28_v0 = vld [vmem:[%s281_s2 + $0x18] sm:$0xff]  ;;  %v27_v1 = vld [vmem:[%s281_s2 + $0x10] sm:$0xff]  ;;  %v23_v2 = vld [vmem:[%s282_s1] sm:$0xff] }
   0x2   :  { %184 = vmatprep.subr.mxu0 %v28_v0  ;;  %v26_v3 = vld [vmem:[%s281_s2 + $0x8] sm:$0xff]  ;;  %192 = vmatprep.mubr.msk.f32.mxu0 %vm36_vm0, %v23_v2  ;;  %v25_v4 = vld [vmem:[%s281_s2] sm:$0xff] }
   0x3   :  { %185 = vmatpush3.msra.mxu0 %v28_v0  ;;  %v24_v5 = vld [vmem:[%s282_s1 + $0x8] sm:$0xff]  ;;  %v173_v7 = vld [vmem:[%s283_s3] ss:$0 sm:$0xff] }
   0x4   :  { %186 = vmatprep.subr.mxu0 %v27_v1  ;;  %v118_v9 = vld [vmem:[%s284_s0] sm:$0xff]  ;;  %v119_v12 = vld [vmem:[%s284_s0 + $0x8] sm:$0xff] }
   0x5   :  { %187 = vmatpush3.msra.mxu0 %v27_v1  ;;  %v176_v34 = vld [vmem:[%s285_s4] ss:$0 sm:$0xff] }
   0x6   :  { %188 = vmatprep.subr.mxu0 %v26_v3  ;;  %v177_v36 = vld [vmem:[%s286_s5] ss:$0 sm:$0xff] }
   0x7   :  { %189 = vmatpush3.msra.mxu0 %v26_v3 }
   0x8   :  { %190 = vmatprep.subr.mxu0 %v25_v4 }
   0x9   :  { %191 = vmatpush3.msra.mxu0 %v25_v4 }
   0xa   :  { %193 = vmatmul.mubr.msk.f32.vlgmr.msra.gmra.mxu0 %vm36_vm0, %v24_v5 }
  0xca   :  { %v194_v6 = vpop.f32.mrf.mxu0 }
  0xcb   :  { %v115_v10 = vadd.f32 %v194_v6, %v173_v7 }
  0xcc   :  { %v109_v8 = vpop.f32.mrf.mxu0 }
  0xcd   :  { %v110_v11 = vadd.f32 %v173_v7, %v109_v8  ;;  %v121_v15 = vadd.f32 %v119_v12, %v115_v10 }
  0xcf   :  { %v120_v13 = vadd.f32 %v118_v9, %v110_v11  ;;  %v125_v16 = vsel %vm36_vm0, %v121_v15, 0.0 }
  0xd1   :  { %v122_v14 = vsel %vm36_vm0, %v120_v13, 0.0 }
  0xd2   :  { %123 = vadd.xlane.f32.xlu0 %v122_v14 }
  0xd6   :  { %126 = vadd.xlane.f32.xlu0 %v125_v16 }
 0x15b   :  { %v124_v17 = vpop.xlane.xlu0 %123 }
 0x15c   :  { %v129_v18 = vmul.f32 0.03125, %v124_v17 }
 0x15e   :  { %v131_v19 = vsub.f32 %v120_v13, %v129_v18 }
 0x15f   :  { %v127_v20 = vpop.xlane.xlu0 %126 }
 0x160   :  { %v130_v21 = vmul.f32 0.03125, %v127_v20  ;;  %v133_v22 = vmul.f32 %v131_v19, %v131_v19 }
 0x162   :  { %v132_v23 = vsub.f32 %v121_v15, %v130_v21  ;;  %v135_v24 = vsel %vm36_vm0, %v133_v22, 0.0 }
 0x163   :  { %136 = vadd.xlane.f32.xlu1 %v135_v24 }
 0x164   :  { %v134_v25 = vmul.f32 %v132_v23, %v132_v23 }
 0x166   :  { %v138_v26 = vsel %vm36_vm0, %v134_v25, 0.0 }
 0x167   :  { %139 = vadd.xlane.f32.xlu1 %v138_v26 }
 0x1ec   :  { %v137_v27 = vpop.xlane.xlu1 %136 }
 0x1ed   :  { %v141_v28 = vmul.f32 0.03125, %v137_v27 }
 0x1ef   :  { %v143_v29 = vadd.f32 1e-05, %v141_v28 }
 0x1f0   :  { %v140_v30 = vpop.xlane.xlu1 %139 }
 0x1f1   :  { %195 = vrsqrt.f32 %v143_v29  ;;  %v142_v31 = vmul.f32 0.03125, %v140_v30 }
 0x1f3   :  { %v144_v32 = vadd.f32 1e-05, %v142_v31 }
 0x1f5   :  { %197 = vrsqrt.f32 %v144_v32 }
 0x1fe   :  { %v196_v33 = vpop.eup %195 }
 0x1ff   :  { %v147_v35 = vmul.f32 %v196_v33, %v131_v19 }
 0x201   :  { %v156_v37 = vmul.f32 %v176_v34, %v147_v35 }
 0x202   :  { %v198_v38 = vpop.eup %197 }
 0x203   :  { %v165_v39 = vadd.f32 %v177_v36, %v156_v37  ;;  %v148_v40 = vmul.f32 %v198_v38, %v132_v23 }
 0x205   :  { %167 = vst.msk [vmem:[%s287_s6] sm:$0xff] %vm36_vm0, %v165_v39  ;;  %v157_v41 = vmul.f32 %v176_v34, %v148_v40 }
 0x207   :  { %v166_v42 = vadd.f32 %v177_v36, %v157_v41 }
 0x209   :  { %168 = vst.msk [vmem:[%s287_s6 + $0x8] sm:$0xff] %vm36_vm0, %v166_v42 }

// kernel: encoder_forward.13
= control target key start
LH: loop header
LB: loop body
LE: loop exit
PB: predicated region body
PF: predicated region fallthrough
CT: control target
= control target key end

     0   :  { %vm39_vm0 = vcmask 261120   ;;  %vm138_vm1 = vcmask 523264   ;;  %s439_s1 = inlined_call_operand.vmem [shape: f32[32,64], index: 1, kind: input, shape index: {}]   ;;  %s440_s0 = inlined_call_operand.vmem [shape: f32[16,32], index: 0, kind: input, shape index: {}]   ;;  %s441_s3 = inlined_call_operand.vmem [shape: f32[64,32], index: 3, kind: input, shape index: {}]   ;;  %s442_s2 = inlined_call_operand.vmem [shape: f32[1,64], index: 2, kind: input, shape index: {}]   ;;  %s443_s4 = inlined_call_operand.vmem [shape: f32[1,32], index: 4, kind: input, shape index: {}]   ;;  %s444_s5 = inlined_call_operand.vmem [shape: f32[1,32], index: 5, kind: input, shape index: {}]   ;;  %s445_s6 = inlined_call_operand.vmem [shape: f32[1,32], index: 6, kind: input, shape index: {}]   ;;  %s446_s7 = inlined_call_operand.vmem [shape: f32[16,32], index: 7, kind: output, shape index: {}]  }
   0x1   :  { %v31_v0 = vld [vmem:[%s439_s1 + $0x18] sm:$0xff]  ;;  %v30_v1 = vld [vmem:[%s439_s1 + $0x10] sm:$0xff]  ;;  %v26_v2 = vld [vmem:[%s440_s0] sm:$0xff] }
   0x2   :  { %297 = vmatprep.subr.mxu0 %v31_v0  ;;  %v29_v3 = vld [vmem:[%s439_s1 + $0x8] sm:$0xff]  ;;  %305 = vmatprep.mubr.msk.f32.mxu0 %vm39_vm0, %v26_v2  ;;  %v130_v4 = vld [vmem:[%s441_s3 + $0x38] sm:$0xff]  ;;  %v129_v5 = vld [vmem:[%s441_s3 + $0x30] sm:$0xff] }
   0x3   :  { %298 = vmatpush3.msra.mxu0 %v31_v0  ;;  %308 = vmatprep.subr.mxu1 %v130_v4  ;;  %v28_v6 = vld [vmem:[%s439_s1] sm:$0xff]  ;;  %v128_v7 = vld [vmem:[%s441_s3 + $0x28] sm:$0xff]  ;;  %v126_v10 = vld [vmem:[%s441_s3 + $0x18] sm:$0xff] }
   0x4   :  { %299 = vmatprep.subr.mxu0 %v30_v1  ;;  %309 = vmatpush3.msra.mxu1 %v130_v4  ;;  %v27_v8 = vld [vmem:[%s440_s0 + $0x8] sm:$0xff]  ;;  %v127_v9 = vld [vmem:[%s441_s3 + $0x20] sm:$0xff]  ;;  %v125_v11 = vld [vmem:[%s441_s3 + $0x10] sm:$0xff] }
   0x5   :  { %300 = vmatpush3.msra.mxu0 %v30_v1  ;;  %310 = vmatprep.subr.mxu1 %v129_v5  ;;  %v124_v12 = vld [vmem:[%s441_s3 + $0x8] sm:$0xff]  ;;  %v123_v13 = vld [vmem:[%s441_s3] sm:$0xff] }
   0x6   :  { %301 = vmatprep.subr.mxu0 %v29_v3  ;;  %311 = vmatpush3.msra.mxu1 %v129_v5  ;;  %v273_v14 = vld [vmem:[%s442_s2] ss:$0 sm:$0xff] }
   0x7   :  { %302 = vmatpush3.msra.mxu0 %v29_v3  ;;  %312 = vmatprep.subr.mxu1 %v128_v7  ;;  %v276_v22 = vld [vmem:[%s443_s4] ss:$0 sm:$0xff] }
   0x8   :  { %303 = vmatprep.subr.mxu0 %v28_v6  ;;  %313 = vmatpush3.msra.mxu1 %v128_v7  ;;  %v279_v47 = vld [vmem:[%s444_s5] ss:$0 sm:$0xff] }
   0x9   :  { %304 = vmatpush3.msra.mxu0 %v28_v6  ;;  %314 = vmatprep.subr.mxu1 %v127_v9  ;;  %v280_v49 = vld [vmem:[%s445_s6] ss:$0 sm:$0xff] }
   0xa   :  { %306 = vmatmul.mubr.msk.f32.vlgmr.msra.gmra.mxu0 %vm39_vm0, %v27_v8  ;;  %315 = vmatpush3.msra.mxu1 %v127_v9 }
   0xb   :  { %316 = vmatprep.subr.mxu1 %v126_v10 }
   0xc   :  { %317 = vmatpush3.msra.mxu1 %v126_v10 }
   0xd   :  { %318 = vmatprep.subr.mxu1 %v125_v11 }
   0xe   :  { %319 = vmatpush3.msra.mxu1 %v125_v11 }
   0xf   :  { %320 = vmatprep.subr.mxu1 %v124_v12 }
  0x10   :  { %321 = vmatpush3.msra.mxu1 %v124_v12 }
  0x11   :  { %322 = vmatprep.subr.mxu1 %v123_v13 }
  0x12   :  { %323 = vmatpush3.msra.mxu1 %v123_v13 }
  0xca   :  { %v307_v15 = vpop.f32.mrf.mxu0 }
  0xcb   :  { %v118_v16 = vadd.f32 %v307_v15, %v273_v14 }
  0xcc   :  { %v112_v17 = vpop.f32.mrf.mxu0 }
  0xcd   :  { %v113_v18 = vadd.f32 %v273_v14, %v112_v17  ;;  %v122_v20 = vmax.f32 %v118_v16, 0.0 }
  0xcf   :  { %v121_v19 = vmax.f32 %v113_v18, 0.0 }
  0xd1   :  { %324 = vmatprep.mubr.msk.f32.mxu1 %vm138_vm1, %v121_v19 }
  0xd2   :  { %325 = vmatmul.mubr.msk.f32.vlgmr.msra.gmra.mxu1 %vm138_vm1, %v122_v20 }
 0x192   :  { %v326_v21 = vpop.f32.mrf.mxu1 }
 0x193   :  { %v217_v24 = vadd.f32 %v326_v21, %v276_v22 }
 0x194   :  { %v211_v23 = vpop.f32.mrf.mxu1 }
 0x195   :  { %v212_v25 = vadd.f32 %v276_v22, %v211_v23  ;;  %v221_v28 = vadd.f32 %v217_v24, %v27_v8 }
 0x197   :  { %v220_v26 = vadd.f32 %v212_v25, %v26_v2  ;;  %v225_v29 = vsel %vm39_vm0, %v221_v28, 0.0 }
 0x199   :  { %v222_v27 = vsel %vm39_vm0, %v220_v26, 0.0 }
 0x19a   :  { %223 = vadd.xlane.f32.xlu0 %v222_v27 }
 0x19e   :  { %226 = vadd.xlane.f32.xlu0 %v225_v29 }
 0x223   :  { %v224_v30 = vpop.xlane.xlu0 %223 }
 0x224   :  { %v229_v31 = vmul.f32 0.03125, %v224_v30 }
 0x226   :  { %v231_v32 = vsub.f32 %v220_v26, %v229_v31 }
 0x227   :  { %v227_v33 = vpop.xlane.xlu0 %226 }
 0x228   :  { %v230_v34 = vmul.f32 0.03125, %v227_v33  ;;  %v233_v35 = vmul.f32 %v231_v32, %v231_v32 }
 0x22a   :  { %v232_v36 = vsub.f32 %v221_v28, %v230_v34  ;;  %v235_v37 = vsel %vm39_vm0, %v233_v35, 0.0 }
 0x22b   :  { %236 = vadd.xlane.f32.xlu1 %v235_v37 }
 0x22c   :  { %v234_v38 = vmul.f32 %v232_v36, %v232_v36 }
 0x22e   :  { %v238_v39 = vsel %vm39_vm0, %v234_v38, 0.0 }
 0x22f   :  { %239 = vadd.xlane.f32.xlu1 %v238_v39 }
 0x2b4   :  { %v237_v40 = vpop.xlane.xlu1 %236 }
 0x2b5   :  { %v241_v41 = vmul.f32 0.03125, %v237_v40 }
 0x2b7   :  { %v243_v42 = vadd.f32 1e-05, %v241_v41 }
 0x2b8   :  { %v240_v43 = vpop.xlane.xlu1 %239 }
 0x2b9   :  { %327 = vrsqrt.f32 %v243_v42  ;;  %v242_v44 = vmul.f32 0.03125, %v240_v43 }
 0x2bb   :  { %v244_v45 = vadd.f32 1e-05, %v242_v44 }
 0x2bd   :  { %329 = vrsqrt.f32 %v244_v45 }
 0x2c6   :  { %v328_v46 = vpop.eup %327 }
 0x2c7   :  { %v247_v48 = vmul.f32 %v328_v46, %v231_v32 }
 0x2c9   :  { %v256_v50 = vmul.f32 %v279_v47, %v247_v48 }
 0x2ca   :  { %v330_v51 = vpop.eup %329 }
 0x2cb   :  { %v265_v52 = vadd.f32 %v280_v49, %v256_v50  ;;  %v248_v53 = vmul.f32 %v330_v51, %v232_v36 }
 0x2cd   :  { %267 = vst.msk [vmem:[%s446_s7] sm:$0xff] %vm39_vm0, %v265_v52  ;;  %v257_v54 = vmul.f32 %v279_v47, %v248_v53 }
 0x2cf   :  { %v266_v55 = vadd.f32 %v280_v49, %v257_v54 }
 0x2d1   :  { %268 = vst.msk [vmem:[%s446_s7 + $0x8] sm:$0xff] %vm39_vm0, %v266_v55 }

// kernel: encoder_forward.14
= control target key start
LH: loop header
LB: loop body
LE: loop exit
PB: predicated region body
PF: predicated region fallthrough
CT: control target
= control target key end

     0   :  { %s619_s24 = smov 0   ;;  %s694_s0 = inlined_call_operand.vmem [shape: f32[2,8,32], index: 0, kind: input, shape index: {}]   ;;  %s695_s1 = inlined_call_operand.vmem [shape: f32[96,32], index: 1, kind: input, shape index: {}]   ;;  %s696_s2 = inlined_call_operand.vmem [shape: f32[1,32], index: 2, kind: input, shape index: {}]   ;;  %s697_s3 = inlined_call_operand.vmem [shape: f32[1,32], index: 3, kind: input, shape index: {}]   ;;  %s698_s4 = inlined_call_operand.vmem [shape: f32[1,32], index: 4, kind: input, shape index: {}]   ;;  %s699_s5 = inlined_call_operand.vmem [shape: f32[1,32], index: 5, kind: input, shape index: {}]   ;;  %s700_s6 = inlined_call_operand.vmem [shape: f32[1,32], index: 6, kind: input, shape index: {}]   ;;  %s701_s7 = inlined_call_operand.vmem [shape: f32[2,4,32], index: 7, kind: output, shape index: {}]  }
   0x1 LB: > { %s494_s25 = sadd.s32 4294967295, %s572_s24   ;;  %p498_p0 = scmp.ge.s32.totalorder %s572_s24, 1  ;;  %s572_s24 = sphi %s619_s24, %s17_s24  }
   0x2   : > { %p236_p1 = scmp.lt.s32.totalorder %s572_s24, 3 }
   0x4   : > { %p237_p2 = pnand %p498_p0, %p236_p1 }
   0x5   : > { %p266_p3 = scmp.lt.s32.totalorder (!%p237_p2), %s494_s25, 1  ;;  %s577_s15 = smov (!%p237_p2), 32  }
   0x6   : > { %240 = sbr.rel (%p237_p2) target bundleno = 372 (0x174), region = 48  ;;  %s578_s20 = smov (!%p237_p2), 64  }
   0xb   : > { %v306_v0 = vld [vmem:[%s695_s1 + $0x58] sm:$0xff]  ;;  %v574_v1 = vmov 0.0   ;;  %v305_v2 = vld [vmem:[%s695_s1 + $0x50] sm:$0xff]  ;;  %vm291_vm0 = vcmask 261120   ;;  %s703_s25 = smov (!%p266_p3, %s494_s25), 1  ;;  %v575_v3 = vmov -inf   ;;  %v400_v23 = vlaneseq }
   0xc   : > { %522 = vmatprep.subr.mxu0 %v574_v1  ;;  %428 = vst.msk [vmem:[#allocation2] sm:$0xff] %vm291_vm0, %v575_v3  ;;  %vm429_vm1 = vcmask 254976   ;;  %v304_v4 = vld [vmem:[%s695_s1 + $0x48] sm:$0xff]  ;;  %s499_s9 = sshll.u32 %s703_s25, 3  ;;  %vm576_vm2 = vmmov 0   ;;  %v303_v5 = vld [vmem:[%s695_s1 + $0x40] sm:$0xff] }
   0xd   : > { %523 = vmatpush3.msra.mxu0 %v306_v0  ;;  %430 = vst.msk [vmem:[#allocation2 + $0x8] sm:$0x3] %vm429_vm1, %v575_v3  ;;  %546 = vmatprep.mubr.msk.f32.mxu0 %vm576_vm2, %v574_v1  ;;  %s269_s12 = scalar_lea.vmem %s694_s0, %s499_s9  ;;  %v302_v8 = vld [vmem:[%s695_s1 + $0x38] sm:$0xff]  ;;  %v301_v9 = vld [vmem:[%s695_s1 + $0x30] sm:$0xff]  ;;  %v300_v10 = vld [vmem:[%s695_s1 + $0x28] sm:$0xff]  ;;  %vm293_vm3 = vcmask 523264  }
   0xe   : > { %524 = vmatprep.subr.mxu0 %v574_v1  ;;  %v274_v6 = vld [vmem:[%s269_s12] sm:$0xff]  ;;  %v298_v12 = vld [vmem:[%s695_s1 + $0x18] sm:$0xff]  ;;  %v297_v13 = vld [vmem:[%s695_s1 + $0x10] sm:$0xff]  ;;  %vm314_vm4 = vcmask 785408   ;;  %v401_v24 = vshrl.u32 %v400_v23, 7  ;;  %s500_s22 = sshll.u32 %s703_s25, 2 }
   0xf   : > { %525 = vmatpush3.msra.mxu0 %v305_v2  ;;  %284 = vrot.lane.b32.xlu0 %v274_v6, %s577_s15  ;;  %v280_v7 = vrot.slane %v274_v6, 1  ;;  %v299_v11 = vld [vmem:[%s695_s1 + $0x20] sm:$0xff]  ;;  %v296_v14 = vld [vmem:[%s695_s1 + $0x8] sm:$0xff]  ;;  %v276_v16 = vrot.slane %v274_v6, 7  ;;  %s273_s27 = scalar_lea.vmem %s701_s7, %s500_s22  ;;  %vm439_vm6 = vcmask 257024  }
  0x10   : > { %526 = vmatprep.subr.mxu0 %v574_v1  ;;  %v295_v15 = vld [vmem:[%s695_s1] sm:$0xff]  ;;  %v402_v25 = vsub.s32 0, %v401_v24 }
  0x11   : > { %527 = vmatpush3.msra.mxu0 %v304_v4  ;;  %v396_v21 = vld [vmem:[%s700_s6] sm:$0x1] }
  0x12   : > { %528 = vmatprep.subr.mxu0 %v574_v1  ;;  %v397_v22 = vadd.f32 1e-05, %v396_v21  ;;  %v501_v27 = vld [vmem:[%s696_s2] ss:$0 sm:$0xff] }
  0x13   : > { %529 = vmatpush3.msra.mxu0 %v303_v5  ;;  %288 = vrot.lane.b32.xlu0 %v280_v7, %s578_s20  ;;  %v503_v29 = vld [vmem:[%s699_s5] ss:$0 sm:$0xff] }
  0x14   : > { %530 = vmatprep.subr.mxu0 %v574_v1  ;;  %562 = vrsqrt.f32 %v397_v22  ;;  %v504_v34 = vld [vmem:[%s697_s3] ss:$0 sm:$0xff] }
  0x15   : > { %531 = vmatpush3.msra.mxu0 %v302_v8  ;;  %v505_v36 = vld [vmem:[%s698_s4] ss:$0 sm:$0xff] }
  0x16   : > { %532 = vmatprep.subr.mxu0 %v574_v1 }
  0x17   : > { %533 = vmatpush3.msra.mxu0 %v301_v9 }
  0x18   : > { %534 = vmatprep.subr.mxu0 %v574_v1 }
  0x19   : > { %535 = vmatpush3.msra.mxu0 %v300_v10 }
  0x1a   : > { %536 = vmatprep.subr.mxu0 %v574_v1 }
  0x1b   : > { %537 = vmatpush3.msra.mxu0 %v299_v11 }
  0x1c   : > { %538 = vmatprep.subr.mxu0 %v574_v1 }
  0x1d   : > { %539 = vmatpush3.msra.mxu0 %v298_v12 }
  0x1e   : > { %540 = vmatprep.subr.mxu0 %v574_v1 }
  0x1f   : > { %541 = vmatpush3.msra.mxu0 %v297_v13 }
  0x20   : > { %542 = vmatprep.subr.mxu0 %v574_v1 }
  0x21   : > { %543 = vmatpush3.msra.mxu0 %v296_v14  ;;  %v563_v26 = vpop.eup %562 }
  0x22   : > { %544 = vmatprep.subr.mxu0 %v574_v1  ;;  %v403_v31 = vrot.slane %v563_v26, %v402_v25 }
  0x23   : > { %545 = vmatpush3.msra.mxu0 %v295_v15 }
  0x81   : > { %v285_v17 = vpop.permute.xlu0 %284 }
  0x82   : > { %v292_v18 = vsel %vm291_vm0, %v276_v16, %v285_v17 }
  0x85   : > { %v289_v19 = vpop.permute.xlu0 %288 }
  0x86   : > { %v294_v20 = vsel %vm293_vm3, %v292_v18, %v289_v19 }
  0x87   : > { %547 = vmatmul.mubr.msk.f32.vlgmr.msra.gmra.mxu0 %vm314_vm4, %v294_v20 }
 0x147   : > { %v384_v28 = vpop.f32.mrf.mxu0 }
 0x148   : > { %v385_v30 = vadd.f32 %v501_v27, %v384_v28 }
 0x149   : > { %v548_v32 = vpop.f32.mrf.mxu0 }
 0x14a   : > { %v395_v33 = vsub.f32 %v385_v30, %v503_v29 }
 0x14c   : > { %v405_v35 = vmul.f32 %v403_v31, %v395_v33 }
 0x14e   : > { %v413_v37 = vmul.f32 %v504_v34, %v405_v35 }
 0x150   : > { %v421_v38 = vadd.f32 %v505_v36, %v413_v37 }
 0x152   : > { %v423_v39 = vmin.f32 %v421_v38, 0.0  ;;  %vm422_vm5 = vcmp.gt.f32.partialorder %v421_v38, 0.0 }
 0x154   : > { %v424_v40 = vmul.f32 1.442695, %v423_v39 }
 0x156   : > { %564 = vpow2.f32 %v424_v40 }
 0x163   : > { %v565_v41 = vpop.eup %564 }
 0x164   : > { %v506_v42 = vadd.f32 -1.0, %v565_v41 }
 0x166   : > { %v427_v43 = vsel %vm422_vm5, %v421_v38, %v506_v42 }
 0x167   : > { %431 = vst.msk [vmem:[#allocation2 + $0x1] sm:$0xff] %vm291_vm0, %v427_v43 }
 0x16e   : > { %v432_v44 = vld [vmem:[#allocation2] ss:$2 sm:$0xf]  ;;  %v434_v45 = vld [vmem:[#allocation2 + $0x1] ss:$2 sm:$0xf] }
 0x16f   : > { %v437_v46 = vmax.f32 %v432_v44, %v434_v45  ;;  %v436_v47 = vld [vmem:[#allocation2 + $0x2] ss:$2 sm:$0xf] }
 0x171   : > { %v438_v48 = vmax.f32 %v437_v46, %v436_v47 }
 0x173   : > { %440 = vst.msk [vmem:[%s273_s27] sm:$0xf] %vm439_vm6, %v438_v48 }
 0x174 PF: > { %s17_s24 = sadd.s32 1, %s572_s24  }
 0x175   : > { %p14_p4 = scmp.ge.s32.totalorder %s17_s24, 4  }
 0x177   :  { %16 = sbr.rel (!%p14_p4) target bundleno = 1 (0x1), region = 80 }

// kernel: encoder_forward.15
= control target key start
LH: loop header
LB: loop body
LE: loop exit
PB: predicated region body
PF: predicated region fallthrough
CT: control target
= control target key end

     0   :  { %v126_v0 = vmov 0.0   ;;  %vm127_vm0 = vmmov 0   ;;  %vm26_vm1 = vcmask 261120   ;;  %vm100_vm2 = vcmask 785408   ;;  %s169_s1 = inlined_call_operand.vmem [shape: f32[32,96], index: 1, kind: input, shape index: {}]   ;;  %s170_s0 = inlined_call_operand.vmem [shape: f32[8,32], index: 0, kind: input, shape index: {}]   ;;  %s171_s2 = inlined_call_operand.vmem [shape: f32[1,96], index: 2, kind: input, shape index: {}]   ;;  %s172_s3 = inlined_call_operand.vmem [shape: f32[8,96], index: 3, kind: output, shape index: {}]  }
   0x1   :  { %113 = vmatprep.subr.mxu0 %v126_v0  ;;  %v18_v1 = vld [vmem:[%s169_s1 + $0x18] sm:$0xff]  ;;  %v17_v2 = vld [vmem:[%s169_s1 + $0x10] sm:$0xff]  ;;  %121 = vmatprep.mubr.msk.f32.mxu0 %vm127_vm0, %v126_v0  ;;  %v16_v3 = vld [vmem:[%s169_s1 + $0x8] sm:$0xff] }
   0x2   :  { %114 = vmatpush3.msra.mxu0 %v18_v1  ;;  %v15_v4 = vld [vmem:[%s169_s1] sm:$0xff] }
   0x3   :  { %115 = vmatprep.subr.mxu0 %v126_v0  ;;  %v14_v5 = vld [vmem:[%s170_s0] sm:$0xff] }
   0x4   :  { %116 = vmatpush3.msra.mxu0 %v17_v2  ;;  %v106_v6 = vld [vmem:[%s171_s2] ss:$0 sm:$0xff] }
   0x5   :  { %117 = vmatprep.subr.mxu0 %v126_v0 }
   0x6   :  { %118 = vmatpush3.msra.mxu0 %v16_v3 }
   0x7   :  { %119 = vmatprep.subr.mxu0 %v126_v0 }
   0x8   :  { %120 = vmatpush3.msra.mxu0 %v15_v4 }
   0x9   :  { %122 = vmatmul.mubr.msk.f32.vlgmr.msra.gmra.mxu0 %vm26_vm1, %v14_v5 }
  0xc9   :  { %v96_v7 = vpop.f32.mrf.mxu0 }
  0xca   :  { %v97_v8 = vadd.f32 %v106_v6, %v96_v7 }
  0xcb   :  { %v123_v9 = vpop.f32.mrf.mxu0 }
  0xcc   :  { %101 = vst.msk [vmem:[%s172_s3] sm:$0xff] %vm100_vm2, %v97_v8 }

// kernel: encoder_forward.16
= control target key start
LH: loop header
LB: loop body
LE: loop exit
PB: predicated region body
PF: predicated region fallthrough
CT: control target
= control target key end

     0   :  { %10 = vsyncpa [#allocation3], 0  ;;  %s811_s0 = inlined_call_operand.vmem [shape: f32[8,4,8], index: 0, kind: input, shape index: {}]   ;;  %s812_s1 = inlined_call_operand.vmem [shape: f32[8,4,8], index: 1, kind: input, shape index: {}]   ;;  %s813_s2 = inlined_call_operand.vmem [shape: f32[8,4,8], index: 2, kind: input, shape index: {}]   ;;  %s814_s3 = inlined_call_operand.vmem [shape: f32[8,4,8], index: 3, kind: output, shape index: {0}]   ;;  %s815_s4 = inlined_call_operand.hbm [shape: f32[8,4,4], index: 4, kind: output, shape index: {1}]  }
   0x1   :  { %12 = vsyncpa [#allocation3 + $0x1], 0  ;;  %s706_s15 = smov 0   ;;  %s708_s16 = smov 0  }
   0x2   :  { %s710_s17 = smov 0   ;;  %s712_s18 = smov 0  }
   0x3 LB: > { %s727_s19 = sadd.s32 4294967295, %s676_s18   ;;  %s540_s20 = sadd.s32 4294967294, %s676_s18   ;;  %s676_s18 = sphi %s712_s18, %s821_s18   ;;  %s672_s17 = sphi %s710_s17, %s820_s17   ;;  %s668_s16 = sphi %s708_s16, %s819_s16   ;;  %s664_s15 = sphi %s706_s15, %s818_s15  }
   0x4   : > { %s731_s21 = sadd.s32 1, %s676_s18   ;;  %s129_s22 = sadd.s32 1, %s672_s17 }
   0x5   : > { %s126_s23 = ssub.s32 %s676_s18, %s731_s21  ;;  %p139_p0 = scmp.ne.s32.totalorder %s672_s17, %s668_s16 }
   0x6   : > { %p127_p1 = scmp.eq.s32.totalorder %s126_s23, 0  ;;  %p140_p2 = scmp.eq.s32.totalorder %s727_s19, 7 }
   0x7   : > { %p145_p3 = scmp.ne.s32.totalorder %s668_s16, %s664_s15  ;;  %p146_p4 = scmp.eq.s32.totalorder %s540_s20, 7 }
   0x8   : > { %s742_s24 = scalar_select %p127_p1, %s672_s17, %s129_s22  }
   0x9   : > { %p744_p5 = por %p140_p2, %p139_p0  ;;  %p748_p6 = por %p146_p4, %p145_p3 }
   0xa   : > { %p543_p7 = scmp.ge.s32.totalorder %s676_s18, 1  ;;  %p185_p8 = scmp.lt.s32.totalorder %s676_s18, 9 }
   0xc   : > { %p186_p9 = pnand %p543_p7, %p185_p8 }
   0xd   : > { %p222_p10 = scmp.lt.s32.totalorder (!%p186_p9), %s727_s19, 7  ;;  %s219_s12 = sand.u32 (!%p186_p9), 1, %s668_s16  }
   0xe   : > { %189 = sbr.rel (%p186_p9) target bundleno = 727 (0x2d7), region = 32  ;;  %s544_s13 = sshll.u32 (!%p186_p9), %s219_s12, 2 }
   0xf   : > { %s221_s14 = scalar_lea.vmem (!%p186_p9), [#allocation2], %s544_s13  ;;  %s554_s20 = sshll.u32 (!%p186_p9), %s727_s19, 6 }
  0x10   : > { %s433_s22 = sshll.u32 (!%p186_p9), %s221_s14, 4  ;;  %s431_s29 = scalar_lea.hbm (!%p186_p9), %s815_s4, %s554_s20  ;;  %s434_s22 = int_to_ptr.vmem [resolvable:$true] %s433_s22 }
  0x11   : > { %s417_s30 = scalar_lea.sflag (!%p186_p9), [#allocation3], %s219_s12  ;;  %s680_s6 = smov (!%p186_p9), [#allocation2]  }
  0x12   : > { %s620_s7 = sshll.u32 (!%p186_p9), %s680_s6, 4  ;;  %s621_s7 = int_to_ptr.vmem [resolvable:$false] %s620_s7 }
  0x13   : > { %v678_v0 = vmov 0.0   ;;  %vm679_vm0 = vmmov 0   ;;  %s223_s27 = scalar_select %p222_p10, %s727_s19, 7  ;;  %vm242_vm1 = vcmask 64512   ;;  %vm319_vm2 = vcmask 27648  }
  0x14   : > { %561 = vmatprep.subr.mxu0 %v678_v0  ;;  %563 = vmatprep.mubr.msk.f32.mxu0 %vm679_vm0, %v678_v0  ;;  %vm335_vm3 = vcmask 1043456   ;;  %vm331_vm4 = vcmask 31744   ;;  %p623_p0 = scmp.lt.s32.totalorder %s434_s22, %s621_s7 }
  0x15   : > { %566 = vmatprep.subr.mxu1 %v678_v0  ;;  %568 = vmatprep.mubr.msk.f32.mxu1 %vm679_vm0, %v678_v0  ;;  %s756_s28 = sshll.u32 %s223_s27, 2 }
  0x16   : > { %s229_s5 = scalar_lea.vmem %s812_s1, %s756_s28  ;;  %s225_s8 = scalar_lea.vmem %s811_s0, %s756_s28 }
  0x17   : > { %v240_v1 = vld [vmem:[%s229_s5] sm:$0xf]  ;;  %s233_s11 = scalar_lea.vmem %s813_s2, %s756_s28  ;;  %s616_s5 = scalar_lea.vmem %s434_s22, 64 }
  0x18   : > { %v238_v2 = vld [vmem:[%s225_s8] sm:$0xf]  ;;  %562 = vmatpush3.xpose.msk.msra.mxu0 %vm242_vm1, %v240_v1  ;;  %p617_p11 = scmp.ne.s32.totalorder %s434_s22, %s616_s5  ;;  %s622_s8 = scalar_lea.vmem %s621_s7, 128 }
  0x19   : > { %v239_v3 = vmul.f32 0.35355338, %v238_v2  ;;  %v241_v12 = vld [vmem:[%s233_s11] sm:$0xf]  ;;  %p624_p1 = scmp.lt.s32.totalorder %s622_s8, %s616_s5 }
  0x1a   : > { %567 = vmatpush3.msk.msra.mxu1 %vm335_vm3, %v241_v12  ;;  %p618_p12 = pnand %p617_p11, %p744_p5 }
  0x1b   : > { %564 = vmatmul.mubr.msk.f32.vlgmr.msra.gmra.mxu0 %vm242_vm1, %v239_v3  ;;  %p625_p2 = por %p624_p1, %p623_p0 }
  0x1c   : > { %p619_p13 = pneg %p618_p12 }
  0x1e   : > { %p626_p3 = pnand %p625_p2, %p619_p13 }
  0xdb   : > { %v315_v4 = vpop.f32.mrf.mxu0 }
  0xdc   : > { %v320_v5 = vsel %vm319_vm2, %v315_v4, -inf }
  0xdd   : > { %321 = vmax.xlane.f32.xlu0 %v320_v5  ;;  %v565_v6 = vpop.f32.mrf.mxu0 }
 0x166   : > { %v322_v7 = vpop.xlane.xlu0 %321 }
 0x167   : > { %v323_v8 = vsub.f32 %v315_v4, %v322_v7 }
 0x169   : > { %v324_v9 = vmul.f32 1.442695, %v323_v8 }
 0x16b   : > { %612 = vpow2.f32 %v324_v9 }
 0x178   : > { %v613_v10 = vpop.eup %612 }
 0x179   : > { %v326_v11 = vsel %vm319_vm2, %v613_v10, 0.0 }
 0x17a   : > { %327 = vadd.xlane.f32.xlu0 %v326_v11 }
 0x203   : > { %v328_v13 = vpop.xlane.xlu0 %327 }
 0x204   : > { %614 = vrcp.f32 %v328_v13 }
 0x211   : > { %v615_v14 = vpop.eup %614 }
 0x212   : > { %v330_v15 = vmul.f32 %v615_v14, %v613_v10 }
 0x214   : > { %569 = vmatmul.mubr.msk.f32.vlgmr.msra.gmra.mxu1 %vm331_vm4, %v330_v15  ;;  %411 = vst.msk [vmem:[%s221_s14] sm:$0xf] %vm319_vm2, %v330_v15 }
 0x215   : > { %629 = shalt.err (!%p626_p3)
}
 0x216   : > { %s630_s19 = scalar_lea.hbm %s431_s29, 64  ;;  %s634_s11 = scalar_lea.hbm %s815_s4, 512 }
 0x217   : > { %p631_p4 = scmp.ne.s32.totalorder %s431_s29, %s630_s19  ;;  %p635_p9 = scmp.lt.s32.totalorder %s431_s29, %s815_s4 }
 0x218   : > { %p636_p10 = scmp.lt.s32.totalorder %s634_s11, %s630_s19 }
 0x219   : > { %p632_p7 = pnand %p631_p4, %p744_p5 }
 0x21a   : > { %p637_p11 = por %p636_p10, %p635_p9 }
 0x21b   : > { %p633_p8 = pneg %p632_p7 }
 0x21d   : > { %p638_p12 = pnand %p637_p11, %p633_p8 }
 0x21f   : > { %641 = shalt.err (!%p638_p12)
}
 0x220   : > { %571 = dma.vmem_to_hbm [thread:$0]  (%p744_p5), %s434_s22, 64, %s431_s29, %s417_s30   ;;  %vm409_vm5 = vcmask 60416  }
 0x221   : > { %s237_s23 = scalar_lea.vmem %s814_s3, %s756_s28 }
 0x2d4   : > { %v405_v16 = vpop.f32.mrf.mxu1 }
 0x2d5   : > { %410 = vst.msk [vmem:[%s237_s23] sm:$0xf] %vm409_vm5, %v405_v16 }
 0x2d6   : > { %v570_v17 = vpop.f32.mrf.mxu1 }
 0x2d7 PF: > { %p577_p13 = scmp.ge.s32.totalorder %s676_s18, 2  ;;  %s452_s27 = sand.u32 1, %s664_s15  }
 0x2d8   : > { %s453_s25 = scalar_lea.sflag [#allocation3], %s452_s27 }
 0x2d9   : > { %p574_p0 = pnand %p577_p13, %p748_p6 }
 0x2db   : > { %p575_p1 = pneg %p574_p0 }
 0x2dd   : > { %659 = dma.done.wait (%p575_p1), %s453_s25, 64  }
 0x2de   : > { %661 = vsyncadd (%p575_p1), %s453_s25, 4294967232  ;;  %p15_p5 = scmp.ge.s32.totalorder %s731_s21, 10   ;;  %s818_s15 = smov %s668_s16 }
 0x2df   : > { %s819_s16 = smov %s672_s17  ;;  %s820_s17 = smov %s742_s24 }
 0x2e0   : > { %s821_s18 = smov %s731_s21  ;;  %17 = sbr.rel (!%p15_p5) target bundleno = 3 (0x3), region = 85 }
 0x2e5   :  { %458 = vsyncpa [#allocation3], 1 }
 0x2e6   :  { %460 = vsyncpa [#allocation3 + $0x1], 1 }

// kernel: encoder_forward.17
= control target key start
LH: loop header
LB: loop body
LE: loop exit
PB: predicated region body
PF: predicated region fallthrough
CT: control target
= control target key end

     0   :  { %v170_v0 = vmov 0.0   ;;  %vm171_vm0 = vmmov 0   ;;  %vm35_vm1 = vcmask 261120   ;;  %s241_s2 = inlined_call_operand.vmem [shape: f32[32,32], index: 2, kind: input, shape index: {}]   ;;  %s242_s1 = inlined_call_operand.vmem [shape: f32[8,32], index: 1, kind: input, shape index: {}]   ;;  %s243_s3 = inlined_call_operand.vmem [shape: f32[1,32], index: 3, kind: input, shape index: {}]   ;;  %s244_s0 = inlined_call_operand.vmem [shape: f32[8,32], index: 0, kind: input, shape index: {}]   ;;  %s245_s4 = inlined_call_operand.vmem [shape: f32[1,32], index: 4, kind: input, shape index: {}]   ;;  %s246_s5 = inlined_call_operand.vmem [shape: f32[1,32], index: 5, kind: input, shape index: {}]   ;;  %s247_s6 = inlined_call_operand.vmem [shape: f32[8,32], index: 6, kind: output, shape index: {}]  }
   0x1   :  { %155 = vmatprep.subr.mxu0 %v170_v0  ;;  %v27_v1 = vld [vmem:[%s241_s2 + $0x18] sm:$0xff]  ;;  %v26_v2 = vld [vmem:[%s241_s2 + $0x10] sm:$0xff]  ;;  %163 = vmatprep.mubr.msk.f32.mxu0 %vm171_vm0, %v170_v0  ;;  %v25_v3 = vld [vmem:[%s241_s2 + $0x8] sm:$0xff] }
   0x2   :  { %156 = vmatpush3.msra.mxu0 %v27_v1  ;;  %v24_v4 = vld [vmem:[%s241_s2] sm:$0xff] }
   0x3   :  { %157 = vmatprep.subr.mxu0 %v170_v0  ;;  %v23_v5 = vld [vmem:[%s242_s1] sm:$0xff] }
   0x4   :  { %158 = vmatpush3.msra.mxu0 %v26_v2  ;;  %v146_v6 = vld [vmem:[%s243_s3] ss:$0 sm:$0xff] }
   0x5   :  { %159 = vmatprep.subr.mxu0 %v170_v0  ;;  %v109_v8 = vld [vmem:[%s244_s0] sm:$0xff] }
   0x6   :  { %160 = vmatpush3.msra.mxu0 %v25_v3  ;;  %v148_v22 = vld [vmem:[%s245_s4] ss:$0 sm:$0xff] }
   0x7   :  { %161 = vmatprep.subr.mxu0 %v170_v0  ;;  %v149_v24 = vld [vmem:[%s246_s5] ss:$0 sm:$0xff] }
   0x8   :  { %162 = vmatpush3.msra.mxu0 %v24_v4 }
   0x9   :  { %164 = vmatmul.mubr.msk.f32.vlgmr.msra.gmra.mxu0 %vm35_vm1, %v23_v5 }
  0xc9   :  { %v105_v7 = vpop.f32.mrf.mxu0 }
  0xca   :  { %v106_v9 = vadd.f32 %v146_v6, %v105_v7 }
  0xcb   :  { %v165_v10 = vpop.f32.mrf.mxu0 }
  0xcc   :  { %v110_v11 = vadd.f32 %v109_v8, %v106_v9 }
  0xce   :  { %v111_v12 = vsel %vm35_vm1, %v110_v11, 0.0 }
  0xcf   :  { %112 = vadd.xlane.f32.xlu0 %v111_v12 }
 0x158   :  { %v113_v13 = vpop.xlane.xlu0 %112 }
 0x159   :  { %v115_v14 = vmul.f32 0.03125, %v113_v13 }
 0x15b   :  { %v116_v15 = vsub.f32 %v110_v11, %v115_v14 }
 0x15d   :  { %v117_v16 = vmul.f32 %v116_v15, %v116_v15 }
 0x15f   :  { %v118_v17 = vsel %vm35_vm1, %v117_v16, 0.0 }
 0x160   :  { %119 = vadd.xlane.f32.xlu0 %v118_v17 }
 0x1e9   :  { %v120_v18 = vpop.xlane.xlu0 %119 }
 0x1ea   :  { %v121_v19 = vmul.f32 0.03125, %v120_v18 }
 0x1ec   :  { %v122_v20 = vadd.f32 1e-05, %v121_v19 }
 0x1ee   :  { %168 = vrsqrt.f32 %v122_v20 }
 0x1fb   :  { %v169_v21 = vpop.eup %168 }
 0x1fc   :  { %v124_v23 = vmul.f32 %v169_v21, %v116_v15 }
 0x1fe   :  { %v132_v25 = vmul.f32 %v148_v22, %v124_v23 }
 0x200   :  { %v140_v26 = vadd.f32 %v149_v24, %v132_v25 }
 0x202   :  { %141 = vst.msk [vmem:[%s247_s6] sm:$0xff] %vm35_vm1, %v140_v26 }

// kernel: encoder_forward.18
= control target key start
LH: loop header
LB: loop body
LE: loop exit
PB: predicated region body
PF: predicated region fallthrough
CT: control target
= control target key end

     0   :  { %v292_v0 = vmov 0.0   ;;  %vm293_vm0 = vmmov 0   ;;  %vm38_vm1 = vcmask 261120   ;;  %vm128_vm2 = vcmask 523264   ;;  %s394_s1 = inlined_call_operand.vmem [shape: f32[32,64], index: 1, kind: input, shape index: {}]   ;;  %s395_s3 = inlined_call_operand.vmem [shape: f32[64,32], index: 3, kind: input, shape index: {}]   ;;  %s396_s0 = inlined_call_operand.vmem [shape: f32[8,32], index: 0, kind: input, shape index: {}]   ;;  %s397_s2 = inlined_call_operand.vmem [shape: f32[1,64], index: 2, kind: input, shape index: {}]   ;;  %s398_s4 = inlined_call_operand.vmem [shape: f32[1,32], index: 4, kind: input, shape index: {}]   ;;  %s399_s5 = inlined_call_operand.vmem [shape: f32[1,32], index: 5, kind: input, shape index: {}]   ;;  %s400_s6 = inlined_call_operand.vmem [shape: f32[1,32], index: 6, kind: input, shape index: {}]   ;;  %s401_s7 = inlined_call_operand.vmem [shape: f32[8,32], index: 7, kind: output, shape index: {}]  }
   0x1   :  { %258 = vmatprep.subr.mxu0 %v292_v0  ;;  %v30_v1 = vld [vmem:[%s394_s1 + $0x18] sm:$0xff]  ;;  %v29_v2 = vld [vmem:[%s394_s1 + $0x10] sm:$0xff]  ;;  %266 = vmatprep.mubr.msk.f32.mxu0 %vm293_vm0, %v292_v0  ;;  %v28_v4 = vld [vmem:[%s394_s1 + $0x8] sm:$0xff] }
   0x2   :  { %259 = vmatpush3.msra.mxu0 %v30_v1  ;;  %269 = vmatprep.subr.mxu1 %v292_v0  ;;  %v120_v3 = vld [vmem:[%s395_s3 + $0x38] sm:$0xff]  ;;  %v119_v5 = vld [vmem:[%s395_s3 + $0x30] sm:$0xff]  ;;  %v118_v6 = vld [vmem:[%s395_s3 + $0x28] sm:$0xff] }
   0x3   :  { %260 = vmatprep.subr.mxu0 %v292_v0  ;;  %270 = vmatpush3.msra.mxu1 %v120_v3  ;;  %v27_v7 = vld [vmem:[%s394_s1] sm:$0xff]  ;;  %v116_v10 = vld [vmem:[%s395_s3 + $0x18] sm:$0xff]  ;;  %v115_v11 = vld [vmem:[%s395_s3 + $0x10] sm:$0xff] }
   0x4   :  { %261 = vmatpush3.msra.mxu0 %v29_v2  ;;  %271 = vmatprep.subr.mxu1 %v292_v0  ;;  %v26_v8 = vld [vmem:[%s396_s0] sm:$0xff]  ;;  %v114_v12 = vld [vmem:[%s395_s3 + $0x8] sm:$0xff] }
   0x5   :  { %262 = vmatprep.subr.mxu0 %v292_v0  ;;  %272 = vmatpush3.msra.mxu1 %v119_v5  ;;  %v117_v9 = vld [vmem:[%s395_s3 + $0x20] sm:$0xff] }
   0x6   :  { %263 = vmatpush3.msra.mxu0 %v28_v4  ;;  %273 = vmatprep.subr.mxu1 %v292_v0  ;;  %v113_v13 = vld [vmem:[%s395_s3] sm:$0xff] }
   0x7   :  { %264 = vmatprep.subr.mxu0 %v292_v0  ;;  %274 = vmatpush3.msra.mxu1 %v118_v6  ;;  %v238_v14 = vld [vmem:[%s397_s2] ss:$0 sm:$0xff] }
   0x8   :  { %265 = vmatpush3.msra.mxu0 %v27_v7  ;;  %275 = vmatprep.subr.mxu1 %v292_v0  ;;  %v240_v19 = vld [vmem:[%s398_s4] ss:$0 sm:$0xff] }
   0x9   :  { %267 = vmatmul.mubr.msk.f32.vlgmr.msra.gmra.mxu0 %vm38_vm1, %v26_v8  ;;  %276 = vmatpush3.msra.mxu1 %v117_v9  ;;  %v242_v34 = vld [vmem:[%s399_s5] ss:$0 sm:$0xff] }
   0xa   :  { %277 = vmatprep.subr.mxu1 %v292_v0  ;;  %285 = vmatprep.mubr.msk.f32.mxu1 %vm293_vm0, %v292_v0  ;;  %v243_v36 = vld [vmem:[%s400_s6] ss:$0 sm:$0xff] }
   0xb   :  { %278 = vmatpush3.msra.mxu1 %v116_v10 }
   0xc   :  { %279 = vmatprep.subr.mxu1 %v292_v0 }
   0xd   :  { %280 = vmatpush3.msra.mxu1 %v115_v11 }
   0xe   :  { %281 = vmatprep.subr.mxu1 %v292_v0 }
   0xf   :  { %282 = vmatpush3.msra.mxu1 %v114_v12 }
  0x10   :  { %283 = vmatprep.subr.mxu1 %v292_v0 }
  0x11   :  { %284 = vmatpush3.msra.mxu1 %v113_v13 }
  0xc9   :  { %v108_v15 = vpop.f32.mrf.mxu0 }
  0xca   :  { %v109_v16 = vadd.f32 %v238_v14, %v108_v15 }
  0xcb   :  { %v268_v17 = vpop.f32.mrf.mxu0 }
  0xcc   :  { %v112_v18 = vmax.f32 %v109_v16, 0.0 }
  0xce   :  { %286 = vmatmul.mubr.msk.f32.vlgmr.msra.gmra.mxu1 %vm128_vm2, %v112_v18 }
 0x18e   :  { %v198_v20 = vpop.f32.mrf.mxu1 }
 0x18f   :  { %v199_v21 = vadd.f32 %v240_v19, %v198_v20 }
 0x190   :  { %v287_v22 = vpop.f32.mrf.mxu1 }
 0x191   :  { %v202_v23 = vadd.f32 %v199_v21, %v26_v8 }
 0x193   :  { %v203_v24 = vsel %vm38_vm1, %v202_v23, 0.0 }
 0x194   :  { %204 = vadd.xlane.f32.xlu0 %v203_v24 }
 0x21d   :  { %v205_v25 = vpop.xlane.xlu0 %204 }
 0x21e   :  { %v207_v26 = vmul.f32 0.03125, %v205_v25 }
 0x220   :  { %v208_v27 = vsub.f32 %v202_v23, %v207_v26 }
 0x222   :  { %v209_v28 = vmul.f32 %v208_v27, %v208_v27 }
 0x224   :  { %v210_v29 = vsel %vm38_vm1, %v209_v28, 0.0 }
 0x225   :  { %211 = vadd.xlane.f32.xlu0 %v210_v29 }
 0x2ae   :  { %v212_v30 = vpop.xlane.xlu0 %211 }
 0x2af   :  { %v213_v31 = vmul.f32 0.03125, %v212_v30 }
 0x2b1   :  { %v214_v32 = vadd.f32 1e-05, %v213_v31 }
 0x2b3   :  { %290 = vrsqrt.f32 %v214_v32 }
 0x2c0   :  { %v291_v33 = vpop.eup %290 }
 0x2c1   :  { %v216_v35 = vmul.f32 %v291_v33, %v208_v27 }
 0x2c3   :  { %v224_v37 = vmul.f32 %v242_v34, %v216_v35 }
 0x2c5   :  { %v232_v38 = vadd.f32 %v243_v36, %v224_v37 }
 0x2c7   :  { %233 = vst.msk [vmem:[%s401_s7] sm:$0xff] %vm38_vm1, %v232_v38 }

// kernel: encoder_forward.19
= control target key start
LH: loop header
LB: loop body
LE: loop exit
PB: predicated region body
PF: predicated region fallthrough
CT: control target
= control target key end

     0   :  { %vm16_vm0 = vcmask 261120   ;;  %s125_s0 = inlined_call_operand.vmem [shape: f32[8,32], index: 0, kind: input, shape index: {}]   ;;  %s126_s1 = inlined_call_operand.vmem [shape: f32[1,32], index: 1, kind: input, shape index: {}]   ;;  %s127_s2 = inlined_call_operand.vmem [shape: f32[1,32], index: 2, kind: input, shape index: {}]   ;;  %s128_s3 = inlined_call_operand.hbm [shape: f32[8,32], index: 3, kind: output, shape index: {}]  }
   0x1   :  { %v15_v0 = vld [vmem:[%s125_s0] sm:$0xff] }
   0x2   :  { %8 = vsyncpa [#allocation3], 0  ;;  %v17_v1 = vsel %vm16_vm0, %v15_v0, 0.0  ;;  %v62_v11 = vld [vmem:[%s126_s1] ss:$0 sm:$0xff]  ;;  %s89_s17 = smov [#allocation2]  }
   0x3   :  { %18 = vadd.xlane.f32.xlu0 %v17_v1  ;;  %v63_v13 = vld [vmem:[%s127_s2] ss:$0 sm:$0xff]  ;;  %s54_s18 = sshll.u32 %s89_s17, 4  ;;  %s55_s18 = int_to_ptr.vmem [resolvable:$true] %s54_s18 }
   0x4   :  { %s67_s19 = scalar_lea.vmem %s55_s18, 128  ;;  %p72_p1 = scmp.lt.s32.totalorder %s55_s18, %s55_s18 }
   0x5   :  { %p68_p0 = scmp.ne.s32.totalorder %s55_s18, %s67_s19  ;;  %p73_p2 = scmp.lt.s32.totalorder %s67_s19, %s67_s19 }
   0x7   :  { %p74_p3 = por %p73_p2, %p72_p1 }
   0x9   :  { %p75_p4 = pnand %p74_p3, %p68_p0 }
  0x8c   :  { %v19_v2 = vpop.xlane.xlu0 %18 }
  0x8d   :  { %v21_v3 = vmul.f32 0.03125, %v19_v2 }
  0x8f   :  { %v22_v4 = vsub.f32 %v15_v0, %v21_v3 }
  0x91   :  { %v23_v5 = vmul.f32 %v22_v4, %v22_v4 }
  0x93   :  { %v24_v6 = vsel %vm16_vm0, %v23_v5, 0.0 }
  0x94   :  { %25 = vadd.xlane.f32.xlu0 %v24_v6 }
 0x11d   :  { %v26_v7 = vpop.xlane.xlu0 %25 }
 0x11e   :  { %v27_v8 = vmul.f32 0.03125, %v26_v7 }
 0x120   :  { %v28_v9 = vadd.f32 1e-05, %v27_v8 }
 0x122   :  { %65 = vrsqrt.f32 %v28_v9 }
 0x12f   :  { %v66_v10 = vpop.eup %65 }
 0x130   :  { %v30_v12 = vmul.f32 %v66_v10, %v22_v4 }
 0x132   :  { %v38_v14 = vmul.f32 %v62_v11, %v30_v12 }
 0x134   :  { %v46_v15 = vadd.f32 %v63_v13, %v38_v14 }
 0x136   :  { %47 = vst.msk [vmem:[#allocation2] sm:$0xff] %vm16_vm0, %v46_v15 }
 0x137   :  { %78 = shalt.err (!%p75_p4)
}
 0x138   :  { %57 = dma.vmem_to_hbm [thread:$0]  %s55_s18, 128, %s128_s3, [#allocation3]  }
 0x139   :  { %87 = dma.done.wait [#allocation3], 128  }
 0x13a   :  { %88 = vsyncadd [#allocation3], 4294967168 }
 0x13b   :  { %61 = vsyncpa [#allocation3], 1 }

</bundles_post_ra>
